<compile_context>
chip_gen: v7x
topology: tpu7x:2x2x1
jax: 0.10.0
libtpu: 0.0.40
codegen_flags: <defaults>
</compile_context>

<pallas_src>
import jax
import jax.numpy as jnp
from jax.experimental import pallas as pl
from jax.experimental.pallas import tpu as pltpu

HIDDEN = 256
MAX_TILE_B = 1024   # ~2-4 MiB working set -> far under VMEM on v5e/v6e/v7x.

_ACT_DTYPE = None


def _round_up(x, m):
    return ((x + m - 1) // m) * m


def _act_dtype():
    """bf16 bias/ReLU epilogues on chips with a bf16 VPU (v6e/v7x); f32 elsewhere (v5e)."""
    global _ACT_DTYPE
    if _ACT_DTYPE is None:
        kind = jax.devices()[0].device_kind.lower()
        _ACT_DTYPE = jnp.bfloat16 if ("v6" in kind or "v7" in kind) else jnp.float32
    return _ACT_DTYPE


def _actor_kernel(x_ref, w1_ref, b1_ref, w2_ref, b2_ref, w3_ref, b3_ref,
                  w4_ref, b4_ref, o_ref):
    f32 = jnp.float32
    bf = w1_ref.dtype        # MXU input dtype (bf16)
    # Epilogue dtype follows the bias dtype (bf16 on v6e/v7x, f32 on v5e).

    x = x_ref[...].astype(bf)                                           # (K, TB)
    h = jnp.dot(w1_ref[...], x, preferred_element_type=f32)            # (256, TB) f32 acc
    h = jnp.maximum(h.astype(b1_ref.dtype) + b1_ref[...], 0.0)

    h = jnp.dot(w2_ref[...], h.astype(bf), preferred_element_type=f32)
    h = jnp.maximum(h.astype(b2_ref.dtype) + b2_ref[...], 0.0)

    h = jnp.dot(w3_ref[...], h.astype(bf), preferred_element_type=f32)
    h = jnp.maximum(h.astype(b3_ref.dtype) + b3_ref[...], 0.0)

    # (1, 256) @ (256, TB) -> lane-dense (1, TB) output row.
    out = jnp.dot(w4_ref[...], h.astype(bf), preferred_element_type=f32)
    o_ref[...] = (out + b4_ref[0, 0]).astype(o_ref.dtype)


def actor_forward(state, env_emb, params):
    """state: (B, state_dim), env_emb: (B, 3) -> (B, 1) float32."""
    B, state_dim = state.shape
    assert env_emb.shape == (B, 3)
    w1, b1, w2, b2, w3, b3, w4, b4 = params
    in_dim = state_dim + 3
    in_dim_pad = w1.shape[1]            # feature dim padded to a multiple of 8 at init

    # --- batch tiling -------------------------------------------------------
    if B <= 512:
        tile_b = max(8, _round_up(B, 8))                       # single tile
    else:
        # Keep >= 2 tiles so the "parallel" batch axis shards across both
        # TensorCores on v7x; tiles stay multiples of 256 (MXU / lane friendly).
        tile_b = min(MAX_TILE_B, _round_up(pl.cdiv(B, 2), 256))
    n_tiles = pl.cdiv(B, tile_b)
    b_pad = n_tiles * tile_b

    # --- fused concat, feature-major layout, explicit zero padding ----------
    x = jnp.concatenate([state.astype(jnp.float32),
                         env_emb.astype(jnp.float32)], axis=-1).T       # (in_dim, B)
    x = jnp.pad(x, ((0, in_dim_pad - in_dim), (0, b_pad - B)))          # (in_dim_pad, b_pad)

    flops = 2 * b_pad * (in_dim_pad * HIDDEN + 2 * HIDDEN * HIDDEN + HIDDEN)
    bytes_accessed = (int(x.size) * 4 + b_pad * 4 +
                      sum(int(p.size) * p.dtype.itemsize for p in params))
    cost = pl.CostEstimate(flops=flops, transcendentals=0,
                           bytes_accessed=bytes_accessed)

    resident = lambda i: (0, 0)   # same block every grid step -> stays in VMEM
    out = pl.pallas_call(
        _actor_kernel,
        out_shape=jax.ShapeDtypeStruct((1, b_pad), jnp.float32),
        grid=(n_tiles,),
        in_specs=[
            pl.BlockSpec((in_dim_pad, tile_b), lambda i: (0, i)),   # x (streamed, lane-dense)
            pl.BlockSpec((HIDDEN, in_dim_pad), resident),           # W1 (bf16)
            pl.BlockSpec((HIDDEN, 1), resident),                    # b1
            pl.BlockSpec((HIDDEN, HIDDEN), resident),               # W2 (bf16)
            pl.BlockSpec((HIDDEN, 1), resident),                    # b2
            pl.BlockSpec((HIDDEN, HIDDEN), resident),               # W3 (bf16)
            pl.BlockSpec((HIDDEN, 1), resident),                    # b3
            pl.BlockSpec((1, HIDDEN), resident),                    # W4 (bf16)
            pl.BlockSpec(memory_space=pltpu.MemorySpace.SMEM),      # b4 scalar (1, 1)
        ],
        out_specs=pl.BlockSpec((1, tile_b), lambda i: (0, i)),      # lane-dense output row
        compiler_params=pltpu.CompilerParams(
            dimension_semantics=("parallel",)),                     # megacore sharding (v7x)
        cost_estimate=cost,
    )(x, w1, b1, w2, b2, w3, b3, w4, b4)

    return out[0, :B].reshape(B, 1)


def init_actor_params(key, state_dim, weight_dtype=jnp.bfloat16):
    """Mirror nn.Linear default init (uniform +-1/sqrt(fan_in)).
    Weights stored PyTorch-style (out_features, in_features) in bf16; W1's input dim is
    zero-padded to a multiple of 8 (matches the padded feature-major input slab).
    b1..b3 stored as (out, 1) columns in the epilogue dtype; b4 as an f32 (1, 1) scalar."""
    in_dim = state_dim + 3
    in_dim_pad = _round_up(in_dim, 8)
    act = _act_dtype()
    dims = [(HIDDEN, in_dim), (HIDDEN, HIDDEN), (HIDDEN, HIDDEN), (1, HIDDEN)]
    keys = jax.random.split(key, 2 * len(dims))
    ws, bs = [], []
    for i, (fan_out, fan_in) in enumerate(dims):
        bound = float(1.0 / (fan_in ** 0.5))
        w = jax.random.uniform(keys[2 * i], (fan_out, fan_in),
                               minval=-bound, maxval=bound, dtype=jnp.float32)
        b = jax.random.uniform(keys[2 * i + 1], (fan_out, 1),
                               minval=-bound, maxval=bound, dtype=jnp.float32)
        ws.append(w)
        bs.append(b)
    w1, w2, w3, w4 = ws
    b1, b2, b3, b4 = bs
    w1 = jnp.pad(w1, ((0, 0), (0, in_dim_pad - in_dim)))   # zero cols for padded features
    return (w1.astype(weight_dtype), b1.astype(act),
            w2.astype(weight_dtype), b2.astype(act),
            w3.astype(weight_dtype), b3.astype(act),
            w4.astype(weight_dtype), b4.reshape(1, 1))


def _reference_forward(state, env_emb, params):
    """Plain-JAX mirror of the kernel math (bf16 weights, f32 accumulation)."""
    w1, b1, w2, b2, w3, b3, w4, b4 = params
    f32 = jnp.float32
    bf = w1.dtype
    in_dim = state.shape[-1] + env_emb.shape[-1]
    x = jnp.concatenate([state.astype(f32), env_emb.astype(f32)], axis=-1)
    x = jnp.pad(x, ((0, 0), (0, w1.shape[1] - in_dim))).astype(bf)
    h = jnp.dot(x, w1.T, preferred_element_type=f32)
    h = jnp.maximum(h.astype(b1.dtype) + b1.reshape(1, -1), 0.0)
    h = jnp.dot(h.astype(bf), w2.T, preferred_element_type=f32)
    h = jnp.maximum(h.astype(b2.dtype) + b2.reshape(1, -1), 0.0)
    h = jnp.dot(h.astype(bf), w3.T, preferred_element_type=f32)
    h = jnp.maximum(h.astype(b3.dtype) + b3.reshape(1, -1), 0.0)
    out = jnp.dot(h.astype(bf), w4.T, preferred_element_type=f32)
    return (out + b4.reshape(1, 1)).astype(f32)


if __name__ == "__main__":
    key = jax.random.PRNGKey(0)
    k_state, k_emb, k_params, k_state2, k_emb2 = jax.random.split(key, 5)

    state_dim = 13   # first Linear input = state_dim + 3 = 16
    params = init_actor_params(k_params, state_dim)

    # Small case: single tile.
    B = 8
    state = jax.random.normal(k_state, (B, state_dim), dtype=jnp.float32)
    env_emb = jax.random.normal(k_emb, (B, 3), dtype=jnp.float32)
    out = jax.block_until_ready(actor_forward(state, env_emb, params))
    ref = _reference_forward(state, env_emb, params)
    assert out.shape == (B, 1)
    assert jnp.allclose(out, ref, atol=1e-2, rtol=1e-2), float(jnp.max(jnp.abs(out - ref)))

    # Multi-tile case: exercises the batch grid (2 tiles of 512, partial last tile).
    B2 = 600
    state2 = jax.random.normal(k_state2, (B2, state_dim), dtype=jnp.float32)
    env_emb2 = jax.random.normal(k_emb2, (B2, 3), dtype=jnp.float32)
    out2 = jax.block_until_ready(actor_forward(state2, env_emb2, params))
    ref2 = _reference_forward(state2, env_emb2, params)
    assert out2.shape == (B2, 1)
    assert jnp.allclose(out2, ref2, atol=1e-2, rtol=1e-2), float(jnp.max(jnp.abs(out2 - ref2)))

    print("KERNEL_OK")
</pallas_src>

<mosaic_0001>
module attributes {stable_mosaic.version = 11 : i64} {
  func.func @_actor_kernel(%arg0: i32, %arg1: memref<16x8xf32, #tpu.memory_space<vmem>>, %arg2: memref<256x16xbf16, #tpu.memory_space<vmem>>, %arg3: memref<256x1xf32, #tpu.memory_space<vmem>>, %arg4: memref<256x256xbf16, #tpu.memory_space<vmem>>, %arg5: memref<256x1xf32, #tpu.memory_space<vmem>>, %arg6: memref<256x256xbf16, #tpu.memory_space<vmem>>, %arg7: memref<256x1xf32, #tpu.memory_space<vmem>>, %arg8: memref<1x256xbf16, #tpu.memory_space<vmem>>, %arg9: memref<1x1xf32, #tpu.memory_space<smem>>, %arg10: memref<1x8xf32, #tpu.memory_space<vmem>>) attributes {dimension_semantics = [#tpu.dimension_semantics<parallel>], iteration_bounds = array<i64: 1>, scalar_prefetch = 0 : i64, scratch_operands = 0 : i64, tpu.core_type = #tpu.core_type<tc>, window_params = [{transform_indices = @transform_0, window_bounds = array<i64: 16, 8>}, {pipeline_mode = #tpu.pipeline_mode<synchronous>, transform_indices = @transform_1, window_bounds = array<i64: 256, 16>}, {pipeline_mode = #tpu.pipeline_mode<synchronous>, transform_indices = @transform_2, window_bounds = array<i64: 256, 1>}, {pipeline_mode = #tpu.pipeline_mode<synchronous>, transform_indices = @transform_3, window_bounds = array<i64: 256, 256>}, {pipeline_mode = #tpu.pipeline_mode<synchronous>, transform_indices = @transform_4, window_bounds = array<i64: 256, 1>}, {pipeline_mode = #tpu.pipeline_mode<synchronous>, transform_indices = @transform_5, window_bounds = array<i64: 256, 256>}, {pipeline_mode = #tpu.pipeline_mode<synchronous>, transform_indices = @transform_6, window_bounds = array<i64: 256, 1>}, {pipeline_mode = #tpu.pipeline_mode<synchronous>, transform_indices = @transform_7, window_bounds = array<i64: 1, 256>}, {transform_indices = @transform_8, window_bounds = array<i64: 1, 1>}, {transform_indices = @transform_9, window_bounds = array<i64: 1, 8>}]} {
    %c0 = arith.constant 0 : index
    %c0_0 = arith.constant 0 : index
    %0 = vector.load %arg1[%c0, %c0_0] : memref<16x8xf32, #tpu.memory_space<vmem>>, vector<16x8xf32>
    %1 = arith.truncf %0 : vector<16x8xf32> to vector<16x8xbf16>
    %c0_1 = arith.constant 0 : index
    %c0_2 = arith.constant 0 : index
    %2 = vector.load %arg2[%c0_1, %c0_2] : memref<256x16xbf16, #tpu.memory_space<vmem>>, vector<256x16xbf16>
    %cst = arith.constant dense<0.000000e+00> : vector<256x8xf32>
    %3 = tpu.matmul %2, %1, %cst {dimension_numbers = #tpu.dot_dimension_numbers<[1], [0], [0], [1], [0, 0, 1, 1], [], []>} : vector<256x16xbf16>, vector<16x8xbf16>, vector<256x8xf32> -> vector<256x8xf32>
    %c0_3 = arith.constant 0 : index
    %c0_4 = arith.constant 0 : index
    %4 = vector.load %arg3[%c0_3, %c0_4] : memref<256x1xf32, #tpu.memory_space<vmem>>, vector<256x1xf32>
    %5 = vector.broadcast %4 : vector<256x1xf32> to vector<256x8xf32>
    %6 = arith.addf %3, %5 : vector<256x8xf32>
    %cst_5 = arith.constant 0.000000e+00 : f32
    %7 = vector.broadcast %cst_5 : f32 to vector<256x8xf32>
    %8 = arith.maximumf %6, %7 : vector<256x8xf32>
    %c0_6 = arith.constant 0 : index
    %c0_7 = arith.constant 0 : index
    %9 = vector.load %arg4[%c0_6, %c0_7] : memref<256x256xbf16, #tpu.memory_space<vmem>>, vector<256x256xbf16>
    %10 = arith.truncf %8 : vector<256x8xf32> to vector<256x8xbf16>
    %cst_8 = arith.constant dense<0.000000e+00> : vector<256x8xf32>
    %11 = tpu.matmul %9, %10, %cst_8 {dimension_numbers = #tpu.dot_dimension_numbers<[1], [0], [0], [1], [0, 0, 1, 1], [], []>} : vector<256x256xbf16>, vector<256x8xbf16>, vector<256x8xf32> -> vector<256x8xf32>
    %c0_9 = arith.constant 0 : index
    %c0_10 = arith.constant 0 : index
    %12 = vector.load %arg5[%c0_9, %c0_10] : memref<256x1xf32, #tpu.memory_space<vmem>>, vector<256x1xf32>
    %13 = vector.broadcast %12 : vector<256x1xf32> to vector<256x8xf32>
    %14 = arith.addf %11, %13 : vector<256x8xf32>
    %cst_11 = arith.constant 0.000000e+00 : f32
    %15 = vector.broadcast %cst_11 : f32 to vector<256x8xf32>
    %16 = arith.maximumf %14, %15 : vector<256x8xf32>
    %c0_12 = arith.constant 0 : index
    %c0_13 = arith.constant 0 : index
    %17 = vector.load %arg6[%c0_12, %c0_13] : memref<256x256xbf16, #tpu.memory_space<vmem>>, vector<256x256xbf16>
    %18 = arith.truncf %16 : vector<256x8xf32> to vector<256x8xbf16>
    %cst_14 = arith.constant dense<0.000000e+00> : vector<256x8xf32>
    %19 = tpu.matmul %17, %18, %cst_14 {dimension_numbers = #tpu.dot_dimension_numbers<[1], [0], [0], [1], [0, 0, 1, 1], [], []>} : vector<256x256xbf16>, vector<256x8xbf16>, vector<256x8xf32> -> vector<256x8xf32>
    %c0_15 = arith.constant 0 : index
    %c0_16 = arith.constant 0 : index
    %20 = vector.load %arg7[%c0_15, %c0_16] : memref<256x1xf32, #tpu.memory_space<vmem>>, vector<256x1xf32>
    %21 = vector.broadcast %20 : vector<256x1xf32> to vector<256x8xf32>
    %22 = arith.addf %19, %21 : vector<256x8xf32>
    %cst_17 = arith.constant 0.000000e+00 : f32
    %23 = vector.broadcast %cst_17 : f32 to vector<256x8xf32>
    %24 = arith.maximumf %22, %23 : vector<256x8xf32>
    %c0_18 = arith.constant 0 : index
    %c0_19 = arith.constant 0 : index
    %25 = vector.load %arg8[%c0_18, %c0_19] : memref<1x256xbf16, #tpu.memory_space<vmem>>, vector<1x256xbf16>
    %26 = arith.truncf %24 : vector<256x8xf32> to vector<256x8xbf16>
    %cst_20 = arith.constant dense<0.000000e+00> : vector<1x8xf32>
    %27 = tpu.matmul %25, %26, %cst_20 {dimension_numbers = #tpu.dot_dimension_numbers<[1], [0], [0], [1], [0, 0, 1, 1], [], []>} : vector<1x256xbf16>, vector<256x8xbf16>, vector<1x8xf32> -> vector<1x8xf32>
    %c0_21 = arith.constant 0 : index
    %c0_22 = arith.constant 0 : index
    %28 = memref.load %arg9[%c0_21, %c0_22] : memref<1x1xf32, #tpu.memory_space<smem>>
    %29 = vector.broadcast %28 : f32 to vector<1x8xf32>
    %30 = arith.addf %27, %29 : vector<1x8xf32>
    %c0_23 = arith.constant 0 : index
    %c0_24 = arith.constant 0 : index
    %31 = vector.load %arg10[%c0_23, %c0_24] : memref<1x8xf32, #tpu.memory_space<vmem>>, vector<1x8xf32>
    tpu.vector_store %arg10[%c0_23, %c0_24], %30 {strides = array<i32>} : memref<1x8xf32, #tpu.memory_space<vmem>>, vector<1x8xf32>,
    return
  }
  func.func @transform_0(%arg0: i32) -> (i32, i32) {
    %c0_i32 = arith.constant 0 : i32
    %c0_i32_0 = arith.constant 0 : i32
    return %c0_i32, %arg0 : i32, i32
  }
  func.func @transform_1(%arg0: i32) -> (i32, i32) {
    %c0_i32 = arith.constant 0 : i32
    %c0_i32_0 = arith.constant 0 : i32
    %c0_i32_1 = arith.constant 0 : i32
    return %c0_i32, %c0_i32_0 : i32, i32
  }
  func.func @transform_2(%arg0: i32) -> (i32, i32) {
    %c0_i32 = arith.constant 0 : i32
    %c0_i32_0 = arith.constant 0 : i32
    %c0_i32_1 = arith.constant 0 : i32
    return %c0_i32, %c0_i32_0 : i32, i32
  }
  func.func @transform_3(%arg0: i32) -> (i32, i32) {
    %c0_i32 = arith.constant 0 : i32
    %c0_i32_0 = arith.constant 0 : i32
    %c0_i32_1 = arith.constant 0 : i32
    return %c0_i32, %c0_i32_0 : i32, i32
  }
  func.func @transform_4(%arg0: i32) -> (i32, i32) {
    %c0_i32 = arith.constant 0 : i32
    %c0_i32_0 = arith.constant 0 : i32
    %c0_i32_1 = arith.constant 0 : i32
    return %c0_i32, %c0_i32_0 : i32, i32
  }
  func.func @transform_5(%arg0: i32) -> (i32, i32) {
    %c0_i32 = arith.constant 0 : i32
    %c0_i32_0 = arith.constant 0 : i32
    %c0_i32_1 = arith.constant 0 : i32
    return %c0_i32, %c0_i32_0 : i32, i32
  }
  func.func @transform_6(%arg0: i32) -> (i32, i32) {
    %c0_i32 = arith.constant 0 : i32
    %c0_i32_0 = arith.constant 0 : i32
    %c0_i32_1 = arith.constant 0 : i32
    return %c0_i32, %c0_i32_0 : i32, i32
  }
  func.func @transform_7(%arg0: i32) -> (i32, i32) {
    %c0_i32 = arith.constant 0 : i32
    %c0_i32_0 = arith.constant 0 : i32
    %c0_i32_1 = arith.constant 0 : i32
    return %c0_i32, %c0_i32_0 : i32, i32
  }
  func.func @transform_8(%arg0: i32) -> (i32, i32) {
    %c0_i32 = arith.constant 0 : i32
    %c0_i32_0 = arith.constant 0 : i32
    %c0_i32_1 = arith.constant 0 : i32
    return %c0_i32, %c0_i32_0 : i32, i32
  }
  func.func @transform_9(%arg0: i32) -> (i32, i32) {
    %c0_i32 = arith.constant 0 : i32
    %c0_i32_0 = arith.constant 0 : i32
    return %c0_i32, %arg0 : i32, i32
  }
}

</mosaic_0001>

<bundles_post_ra>
// kernel: tpu_custom_call.1
= control target key start
LH: loop header
LB: loop body
LE: loop exit
PB: predicated region body
PF: predicated region fallthrough
CT: control target
= control target key end

     0   :  { %v2407_v3 = vmov 0   ;;  %vm342_vm0 = vcmask 130048   ;;  %s3250_s0 = inlined_call_operand.vmem [shape: f32[16,8], index: 0, kind: input, shape index: {}]   ;;  %s3251_s1 = inlined_call_operand.vmem [shape: bf16[256,16], index: 1, kind: input, shape index: {}]   ;;  %s3252_s2 = inlined_call_operand.vmem [shape: f32[256,1], index: 2, kind: input, shape index: {}]   ;;  %s3253_s3 = inlined_call_operand.vmem [shape: bf16[256,256], index: 3, kind: input, shape index: {}]   ;;  %s3254_s4 = inlined_call_operand.vmem [shape: f32[256,1], index: 4, kind: input, shape index: {}]   ;;  %s3255_s5 = inlined_call_operand.vmem [shape: bf16[256,256], index: 5, kind: input, shape index: {}]   ;;  %s3256_s6 = inlined_call_operand.vmem [shape: f32[256,1], index: 6, kind: input, shape index: {}]   ;;  %s3257_s7 = inlined_call_operand.vmem [shape: bf16[1,256], index: 7, kind: input, shape index: {}]   ;;  %s3258_s8 = inlined_call_operand.<no memory space> [shape: f32[1,1], index: 8, kind: input, shape index: {}]   ;;  %s3259_s9 = inlined_call_operand.hbm [shape: f32[1,8], index: 9, kind: output, shape index: {}]  }
   0x1   :  { %v86_v0 = vld [vmem:[%s3252_s2 + $0x80] sm:$0xff]  ;;  %2270 = vset.pattern.permute.xlu1 %v2407_v3  ;;  %2269 = vset.pattern.permute.xlu0 %v2407_v3  ;;  %v36_v4 = vld [vmem:[%s3250_s0 + $0x8] sm:$0xff]  ;;  %v88_v12 = vld [vmem:[%s3252_s2 + $0x90] sm:$0xff] }
   0x2   :  { %v70_v1 = vld [vmem:[%s3252_s2] sm:$0xff]  ;;  %v87_v5 = vld [vmem:[%s3252_s2 + $0x88] sm:$0xff]  ;;  %184 = vperm.xlu0 %2269, %v86_v0   ;;  %v89_v13 = vld [vmem:[%s3252_s2 + $0x98] sm:$0xff] }
   0x3   :  { %v35_v2 = vld [vmem:[%s3250_s0] sm:$0xff]  ;;  %v71_v6 = vld [vmem:[%s3252_s2 + $0x8] sm:$0xff]  ;;  %104 = vperm.xlu1 %2270, %v70_v1   ;;  %v2275_v14 = vld [vmem:[%s3251_s1 + $0x10] sm:$0xff]  }
   0x4   :  { %v37_v7 = vpack.c.bf16 %v36_v4, %v35_v2  ;;  %v2271_v8 = vld [vmem:[%s3251_s1] sm:$0xff]   ;;  %v2273_v10 = vld [vmem:[%s3251_s1 + $0x8] sm:$0xff]   ;;  %v2276_v15 = vld [vmem:[%s3251_s1 + $0x50] sm:$0xff]  }
   0x5   :  { %v2272_v9 = vld [vmem:[%s3251_s1 + $0x40] sm:$0xff]   ;;  %v2274_v11 = vld [vmem:[%s3251_s1 + $0x48] sm:$0xff]   ;;  %2232 = vmatprep.mubr.msk.bf16.mxu0 %vm342_vm0, %v2271_v8  ;;  %v72_v16 = vld [vmem:[%s3252_s2 + $0x10] sm:$0xff] }
   0x6   :  { %2230 = vmatprep.subr.bf16.mxu0 %v37_v7  ;;  %2264 = vmatprep.subr.bf16.mxu1 %v37_v7  ;;  %v73_v17 = vld [vmem:[%s3252_s2 + $0x18] sm:$0xff]  ;;  %v90_v20 = vld [vmem:[%s3252_s2 + $0xa0] sm:$0xff]  ;;  %v91_v23 = vld [vmem:[%s3252_s2 + $0xa8] sm:$0xff] }
   0x7   :  { %2231 = vmatpush3.bf16.msra.mxu0 %v37_v7  ;;  %2265 = vmatpush3.bf16.msra.mxu1 %v37_v7  ;;  %v2277_v18 = vld [vmem:[%s3251_s1 + $0x18] sm:$0xff]   ;;  %v2279_v21 = vld [vmem:[%s3251_s1 + $0x20] sm:$0xff]   ;;  %v75_v25 = vld [vmem:[%s3252_s2 + $0x28] sm:$0xff] }
   0x8   :  { %189 = vperm.xlu0 %2269, %v87_v5   ;;  %109 = vperm.xlu1 %2270, %v71_v6   ;;  %v2278_v19 = vld [vmem:[%s3251_s1 + $0x58] sm:$0xff]   ;;  %v2280_v22 = vld [vmem:[%s3251_s1 + $0x60] sm:$0xff]   ;;  %v2281_v26 = vld [vmem:[%s3251_s1 + $0x28] sm:$0xff]  }
   0x9   :  { %2248 = vmatprep.mubr.msk.bf16.mxu1 %vm342_vm0, %v2272_v9  ;;  %v74_v24 = vld [vmem:[%s3252_s2 + $0x20] sm:$0xff]  ;;  %v2282_v27 = vld [vmem:[%s3251_s1 + $0x68] sm:$0xff]   ;;  %v2283_v28 = vld [vmem:[%s3251_s1 + $0x30] sm:$0xff]  }
   0xa   :  { %2233 = vmatmul.mubr.msk.bf16.vlgmr.msra.gmra.mrb[0].mxu0 %vm342_vm0, %v2273_v10  ;;  %2249 = vmatmul.mubr.msk.bf16.vlgmr.msra.gmra.mrb[0].mxu1 %vm342_vm0, %v2274_v11  ;;  %v2284_v29 = vld [vmem:[%s3251_s1 + $0x70] sm:$0xff]   ;;  %v93_v31 = vld [vmem:[%s3252_s2 + $0xb8] sm:$0xff]  ;;  %v94_v36 = vld [vmem:[%s3252_s2 + $0xc0] sm:$0xff] }
   0xb   :  { %2236 = vmatprep.mubr.msk.bf16.mxu0 %vm342_vm0, %v2275_v14  ;;  %2252 = vmatprep.mubr.msk.bf16.mxu1 %vm342_vm0, %v2276_v15  ;;  %v92_v30 = vld [vmem:[%s3252_s2 + $0xb0] sm:$0xff]  ;;  %v77_v33 = vld [vmem:[%s3252_s2 + $0x38] sm:$0xff]  ;;  %v95_v37 = vld [vmem:[%s3252_s2 + $0xc8] sm:$0xff] }
   0xc   :  { %194 = vperm.xlu0 %2269, %v88_v12   ;;  %199 = vperm.xlu1 %2270, %v89_v13   ;;  %v76_v32 = vld [vmem:[%s3252_s2 + $0x30] sm:$0xff]  ;;  %v2285_v34 = vld [vmem:[%s3251_s1 + $0x38] sm:$0xff]   ;;  %v78_v38 = vld [vmem:[%s3252_s2 + $0x40] sm:$0xff] }
   0xd   :  { %v2286_v35 = vld [vmem:[%s3251_s1 + $0x78] sm:$0xff]   ;;  %v79_v39 = vld [vmem:[%s3252_s2 + $0x48] sm:$0xff]  ;;  %v96_v40 = vld [vmem:[%s3252_s2 + $0xd0] sm:$0xff] }
   0xe   :  { %v97_v41 = vld [vmem:[%s3252_s2 + $0xd8] sm:$0xff]  ;;  %v80_v42 = vld [vmem:[%s3252_s2 + $0x50] sm:$0xff]  ;;  %v98_v44 = vld [vmem:[%s3252_s2 + $0xe0] sm:$0xff] }
   0xf   :  { %v81_v43 = vld [vmem:[%s3252_s2 + $0x58] sm:$0xff]  ;;  %v99_v45 = vld [vmem:[%s3252_s2 + $0xe8] sm:$0xff]  ;;  %v82_v46 = vld [vmem:[%s3252_s2 + $0x60] sm:$0xff] }
  0x10   :  { %114 = vperm.xlu0 %2269, %v72_v16   ;;  %119 = vperm.xlu1 %2270, %v73_v17   ;;  %v83_v47 = vld [vmem:[%s3252_s2 + $0x68] sm:$0xff]  ;;  %v100_v48 = vld [vmem:[%s3252_s2 + $0xf0] sm:$0xff]  ;;  %v101_v49 = vld [vmem:[%s3252_s2 + $0xf8] sm:$0xff] }
  0x11   :  { %v84_v50 = vld [vmem:[%s3252_s2 + $0x70] sm:$0xff]  ;;  %v85_v51 = vld [vmem:[%s3252_s2 + $0x78] sm:$0xff]  ;;  %v648_v52 = vld [vmem:[%s3254_s4 + $0x80] sm:$0xff] }
  0x12   :  { %2237 = vmatmul.mubr.msk.bf16.gmra.mrb[4].mxu0 %vm342_vm0, %v2277_v18  ;;  %2253 = vmatmul.mubr.msk.bf16.gmra.mrb[4].mxu1 %vm342_vm0, %v2278_v19  ;;  %v649_v53 = vld [vmem:[%s3254_s4 + $0x88] sm:$0xff]  ;;  %v632_v54 = vld [vmem:[%s3254_s4] sm:$0xff] }
  0x13   :  { %2240 = vmatprep.mubr.msk.bf16.mxu0 %vm342_vm0, %v2279_v21  ;;  %2256 = vmatprep.mubr.msk.bf16.mxu1 %vm342_vm0, %v2280_v22  ;;  %v633_v55 = vld [vmem:[%s3254_s4 + $0x8] sm:$0xff] }
  0x14   :  { %204 = vperm.xlu0 %2269, %v90_v20   ;;  %209 = vperm.xlu1 %2270, %v91_v23  }
  0x18   :  { %124 = vperm.xlu0 %2269, %v74_v24   ;;  %129 = vperm.xlu1 %2270, %v75_v25  }
  0x1a   :  { %2241 = vmatmul.mubr.msk.bf16.gmra.mrb[8].mxu0 %vm342_vm0, %v2281_v26  ;;  %2257 = vmatmul.mubr.msk.bf16.gmra.mrb[8].mxu1 %vm342_vm0, %v2282_v27 }
  0x1b   :  { %2244 = vmatprep.mubr.msk.bf16.mxu0 %vm342_vm0, %v2283_v28  ;;  %2260 = vmatprep.mubr.msk.bf16.mxu1 %vm342_vm0, %v2284_v29 }
  0x1c   :  { %214 = vperm.xlu0 %2269, %v92_v30   ;;  %219 = vperm.xlu1 %2270, %v93_v31  }
  0x20   :  { %134 = vperm.xlu0 %2269, %v76_v32   ;;  %139 = vperm.xlu1 %2270, %v77_v33  }
  0x22   :  { %2245 = vmatmul.mubr.msk.bf16.gmra.mrb[12].mxu0 %vm342_vm0, %v2285_v34  ;;  %2261 = vmatmul.mubr.msk.bf16.gmra.mrb[12].mxu1 %vm342_vm0, %v2286_v35 }
  0x24   :  { %224 = vperm.xlu0 %2269, %v94_v36   ;;  %229 = vperm.xlu1 %2270, %v95_v37  }
  0x28   :  { %144 = vperm.xlu0 %2269, %v78_v38   ;;  %149 = vperm.xlu1 %2270, %v79_v39  }
  0x2c   :  { %234 = vperm.xlu0 %2269, %v96_v40   ;;  %239 = vperm.xlu1 %2270, %v97_v41  }
  0x30   :  { %154 = vperm.xlu0 %2269, %v80_v42   ;;  %159 = vperm.xlu1 %2270, %v81_v43  }
  0x34   :  { %244 = vperm.xlu0 %2269, %v98_v44   ;;  %249 = vperm.xlu1 %2270, %v99_v45  }
  0x38   :  { %164 = vperm.xlu0 %2269, %v82_v46   ;;  %169 = vperm.xlu1 %2270, %v83_v47  }
  0x3c   :  { %254 = vperm.xlu0 %2269, %v100_v48   ;;  %259 = vperm.xlu1 %2270, %v101_v49  }
  0x40   :  { %174 = vperm.xlu0 %2269, %v84_v50   ;;  %179 = vperm.xlu1 %2270, %v85_v51  }
  0x44   :  { %746 = vperm.xlu0 %2269, %v648_v52   ;;  %751 = vperm.xlu1 %2270, %v649_v53  }
  0x48   :  { %666 = vperm.xlu0 %2269, %v632_v54   ;;  %671 = vperm.xlu1 %2270, %v633_v55  }
  0x49   :  { %15 = vsyncpa [#allocation4], 0  ;;  %v650_v56 = vld [vmem:[%s3254_s4 + $0x90] sm:$0xff]  ;;  %v651_v57 = vld [vmem:[%s3254_s4 + $0x98] sm:$0xff]  ;;  %s2409_s21 = smov [#allocation3]   ;;  %vm1854_vm1 = vcmask 57344  }
  0x4a   :  { %v634_v58 = vld [vmem:[%s3254_s4 + $0x10] sm:$0xff]  ;;  %v635_v59 = vld [vmem:[%s3254_s4 + $0x18] sm:$0xff]  ;;  %v652_v60 = vld [vmem:[%s3254_s4 + $0xa0] sm:$0xff]  ;;  %s1862_s22 = sshll.u32 %s2409_s21, 4  ;;  %s1863_s22 = int_to_ptr.vmem [resolvable:$true] %s1862_s22 }
  0x4b   :  { %v653_v61 = vld [vmem:[%s3254_s4 + $0xa8] sm:$0xff]  ;;  %v636_v62 = vld [vmem:[%s3254_s4 + $0x20] sm:$0xff]  ;;  %v654_v0 = vld [vmem:[%s3254_s4 + $0xb0] sm:$0xff]  ;;  %s2383_s23 = scalar_lea.vmem %s1863_s22, 16  ;;  %s2387_s24 = scalar_lea.vmem %s1863_s22, 32 }
  0x4c   :  { %756 = vperm.xlu0 %2269, %v650_v56   ;;  %761 = vperm.xlu1 %2270, %v651_v57   ;;  %v637_v63 = vld [vmem:[%s3254_s4 + $0x28] sm:$0xff]  ;;  %v655_v1 = vld [vmem:[%s3254_s4 + $0xb8] sm:$0xff]  ;;  %v638_v2 = vld [vmem:[%s3254_s4 + $0x30] sm:$0xff]  ;;  %p2384_p0 = scmp.ne.s32.totalorder %s1863_s22, %s2383_s23  ;;  %p2388_p1 = scmp.lt.s32.totalorder %s1863_s22, %s1863_s22 }
  0x4d   :  { %v639_v3 = vld [vmem:[%s3254_s4 + $0x38] sm:$0xff]  ;;  %v656_v4 = vld [vmem:[%s3254_s4 + $0xc0] sm:$0xff]  ;;  %v657_v5 = vld [vmem:[%s3254_s4 + $0xc8] sm:$0xff]  ;;  %p2389_p2 = scmp.lt.s32.totalorder %s2387_s24, %s2383_s23 }
  0x4e   :  { %v640_v6 = vld [vmem:[%s3254_s4 + $0x40] sm:$0xff]  ;;  %v641_v7 = vld [vmem:[%s3254_s4 + $0x48] sm:$0xff]  ;;  %v658_v8 = vld [vmem:[%s3254_s4 + $0xd0] sm:$0xff] }
  0x4f   :  { %v659_v9 = vld [vmem:[%s3254_s4 + $0xd8] sm:$0xff]  ;;  %v642_v10 = vld [vmem:[%s3254_s4 + $0x50] sm:$0xff]  ;;  %v660_v12 = vld [vmem:[%s3254_s4 + $0xe0] sm:$0xff]  ;;  %p2390_p3 = por %p2389_p2, %p2388_p1 }
  0x50   :  { %676 = vperm.xlu0 %2269, %v634_v58   ;;  %681 = vperm.xlu1 %2270, %v635_v59   ;;  %v643_v11 = vld [vmem:[%s3254_s4 + $0x58] sm:$0xff]  ;;  %v661_v13 = vld [vmem:[%s3254_s4 + $0xe8] sm:$0xff]  ;;  %v644_v14 = vld [vmem:[%s3254_s4 + $0x60] sm:$0xff] }
  0x51   :  { %v645_v15 = vld [vmem:[%s3254_s4 + $0x68] sm:$0xff]  ;;  %v662_v16 = vld [vmem:[%s3254_s4 + $0xf0] sm:$0xff]  ;;  %v663_v17 = vld [vmem:[%s3254_s4 + $0xf8] sm:$0xff]  ;;  %p2391_p4 = pnand %p2390_p3, %p2384_p0 }
  0x52   :  { %v646_v18 = vld [vmem:[%s3254_s4 + $0x70] sm:$0xff]  ;;  %v647_v19 = vld [vmem:[%s3254_s4 + $0x78] sm:$0xff]  ;;  %v1241_v20 = vld [vmem:[%s3256_s6 + $0x80] sm:$0xff] }
  0x53   :  { %v1242_v21 = vld [vmem:[%s3256_s6 + $0x88] sm:$0xff]  ;;  %v1225_v22 = vld [vmem:[%s3256_s6] sm:$0xff]  ;;  %v1243_v25 = vld [vmem:[%s3256_s6 + $0x90] sm:$0xff] }
  0x54   :  { %766 = vperm.xlu0 %2269, %v652_v60   ;;  %771 = vperm.xlu1 %2270, %v653_v61   ;;  %v1226_v23 = vld [vmem:[%s3256_s6 + $0x8] sm:$0xff]  ;;  %v1244_v26 = vld [vmem:[%s3256_s6 + $0x98] sm:$0xff]  ;;  %v1227_v27 = vld [vmem:[%s3256_s6 + $0x10] sm:$0xff] }
  0x55   :  { %v2289_v24 = vld [vmem:[%s3253_s3 + $0x4] ss:$8 sps:$4 sm:$0xff]   ;;  %v1228_v28 = vld [vmem:[%s3256_s6 + $0x18] sm:$0xff]  ;;  %v1247_v35 = vld [vmem:[%s3256_s6 + $0xb0] sm:$0xff] }
  0x56   :  { %1016 = vmatprep.mubr.bf16.mxu1 %v2289_v24  ;;  %v1245_v29 = vld [vmem:[%s3256_s6 + $0xa0] sm:$0xff]  ;;  %v1246_v30 = vld [vmem:[%s3256_s6 + $0xa8] sm:$0xff]  ;;  %v1248_v36 = vld [vmem:[%s3256_s6 + $0xb8] sm:$0xff] }
  0x57   :  { %v1229_v33 = vld [vmem:[%s3256_s6 + $0x20] sm:$0xff]  ;;  %v1230_v34 = vld [vmem:[%s3256_s6 + $0x28] sm:$0xff]  ;;  %v1231_v39 = vld [vmem:[%s3256_s6 + $0x30] sm:$0xff] }
  0x58   :  { %686 = vperm.xlu0 %2269, %v636_v62   ;;  %691 = vperm.xlu1 %2270, %v637_v63   ;;  %v1232_v40 = vld [vmem:[%s3256_s6 + $0x38] sm:$0xff]  ;;  %v1249_v43 = vld [vmem:[%s3256_s6 + $0xc0] sm:$0xff]  ;;  %v1250_v44 = vld [vmem:[%s3256_s6 + $0xc8] sm:$0xff] }
  0x59   :  { %v1233_v45 = vld [vmem:[%s3256_s6 + $0x40] sm:$0xff]  ;;  %v1234_v46 = vld [vmem:[%s3256_s6 + $0x48] sm:$0xff]  ;;  %v1251_v49 = vld [vmem:[%s3256_s6 + $0xd0] sm:$0xff] }
  0x5a   :  { %v1252_v50 = vld [vmem:[%s3256_s6 + $0xd8] sm:$0xff]  ;;  %v1235_v53 = vld [vmem:[%s3256_s6 + $0x50] sm:$0xff]  ;;  %v1253_v55 = vld [vmem:[%s3256_s6 + $0xe0] sm:$0xff] }
  0x5b   :  { %v1236_v54 = vld [vmem:[%s3256_s6 + $0x58] sm:$0xff]  ;;  %v1254_v56 = vld [vmem:[%s3256_s6 + $0xe8] sm:$0xff]  ;;  %v1237_v59 = vld [vmem:[%s3256_s6 + $0x60] sm:$0xff] }
  0x5c   :  { %776 = vperm.xlu0 %2269, %v654_v0   ;;  %781 = vperm.xlu1 %2270, %v655_v1   ;;  %v1238_v60 = vld [vmem:[%s3256_s6 + $0x68] sm:$0xff]  ;;  %v1255_v63 = vld [vmem:[%s3256_s6 + $0xf0] sm:$0xff]  ;;  %v1256_v0 = vld [vmem:[%s3256_s6 + $0xf8] sm:$0xff] }
  0x5d   :  { %v1239_v1 = vld [vmem:[%s3256_s6 + $0x70] sm:$0xff] }
  0x60   :  { %696 = vperm.xlu0 %2269, %v638_v2   ;;  %701 = vperm.xlu1 %2270, %v639_v3   ;;  %v1240_v2 = vld [vmem:[%s3256_s6 + $0x78] sm:$0xff] }
  0x64   :  { %786 = vperm.xlu0 %2269, %v656_v4   ;;  %791 = vperm.xlu1 %2270, %v657_v5  }
  0x68   :  { %706 = vperm.xlu0 %2269, %v640_v6   ;;  %711 = vperm.xlu1 %2270, %v641_v7  }
  0x6c   :  { %796 = vperm.xlu0 %2269, %v658_v8   ;;  %801 = vperm.xlu1 %2270, %v659_v9  }
  0x70   :  { %716 = vperm.xlu0 %2269, %v642_v10   ;;  %721 = vperm.xlu1 %2270, %v643_v11  }
  0x74   :  { %806 = vperm.xlu0 %2269, %v660_v12   ;;  %811 = vperm.xlu1 %2270, %v661_v13  }
  0x78   :  { %726 = vperm.xlu0 %2269, %v644_v14   ;;  %731 = vperm.xlu1 %2270, %v645_v15  }
  0x7c   :  { %816 = vperm.xlu0 %2269, %v662_v16   ;;  %821 = vperm.xlu1 %2270, %v663_v17  }
  0x80   :  { %736 = vperm.xlu0 %2269, %v646_v18   ;;  %741 = vperm.xlu1 %2270, %v647_v19  }
  0x81   :  { %v2755_v31 = vpop.permute.xlu0 %184 }
  0x82   :  { %v2757_v32 = vpop.permute.xlu1 %104 }
  0x84   :  { %1339 = vperm.xlu0 %2269, %v1241_v20   ;;  %1344 = vperm.xlu1 %2270, %v1242_v21  }
  0x87   :  { %v2771_v37 = vpop.permute.xlu0 %189  ;;  %v2773_v38 = vpop.permute.xlu1 %109 }
  0x88   :  { %1259 = vperm.xlu0 %2269, %v1225_v22   ;;  %1264 = vperm.xlu1 %2270, %v1226_v23  }
  0x8b   :  { %v195_v41 = vpop.permute.xlu0 %194  ;;  %v2781_v42 = vpop.permute.xlu1 %199 }
  0x8c   :  { %1349 = vperm.xlu0 %2269, %v1243_v25   ;;  %1354 = vperm.xlu1 %2270, %v1244_v26  }
  0x8f   :  { %v115_v47 = vpop.permute.xlu0 %114  ;;  %v120_v48 = vpop.permute.xlu1 %119 }
  0x90   :  { %1269 = vperm.xlu0 %2269, %v1227_v27   ;;  %1274 = vperm.xlu1 %2270, %v1228_v28  }
  0x93   :  { %v2801_v51 = vpop.permute.xlu0 %204  ;;  %v2803_v52 = vpop.permute.xlu1 %209 }
  0x94   :  { %1359 = vperm.xlu0 %2269, %v1245_v29   ;;  %1364 = vperm.xlu1 %2270, %v1246_v30  }
  0x97   :  { %v2817_v57 = vpop.permute.xlu0 %124  ;;  %v2819_v58 = vpop.permute.xlu1 %129 }
  0x98   :  { %1279 = vperm.xlu0 %2269, %v1229_v33   ;;  %1284 = vperm.xlu1 %2270, %v1230_v34  }
  0x9b   :  { %v215_v61 = vpop.permute.xlu0 %214  ;;  %v2827_v62 = vpop.permute.xlu1 %219 }
  0x9c   :  { %1369 = vperm.xlu0 %2269, %v1247_v35   ;;  %1374 = vperm.xlu1 %2270, %v1248_v36  }
  0x9f   :  { %v135_v3 = vpop.permute.xlu0 %134  ;;  %v140_v4 = vpop.permute.xlu1 %139 }
  0xa0   :  { %1289 = vperm.xlu0 %2269, %v1231_v39   ;;  %1294 = vperm.xlu1 %2270, %v1232_v40  }
  0xa3   :  { %v2841_v5 = vpop.permute.xlu0 %224  ;;  %v2843_v6 = vpop.permute.xlu1 %229 }
  0xa4   :  { %1379 = vperm.xlu0 %2269, %v1249_v43   ;;  %1384 = vperm.xlu1 %2270, %v1250_v44  }
  0xa7   :  { %v2845_v7 = vpop.permute.xlu0 %144  ;;  %v2847_v8 = vpop.permute.xlu1 %149 }
  0xa8   :  { %1299 = vperm.xlu0 %2269, %v1233_v45   ;;  %1304 = vperm.xlu1 %2270, %v1234_v46  }
  0xab   :  { %v2849_v9 = vpop.permute.xlu0 %234  ;;  %v2851_v10 = vpop.permute.xlu1 %239 }
  0xac   :  { %1389 = vperm.xlu0 %2269, %v1251_v49   ;;  %1394 = vperm.xlu1 %2270, %v1252_v50  }
  0xaf   :  { %v2853_v11 = vpop.permute.xlu0 %154  ;;  %v2855_v12 = vpop.permute.xlu1 %159 }
  0xb0   :  { %1309 = vperm.xlu0 %2269, %v1235_v53   ;;  %1314 = vperm.xlu1 %2270, %v1236_v54  }
  0xb3   :  { %v2857_v13 = vpop.permute.xlu0 %244  ;;  %v2859_v14 = vpop.permute.xlu1 %249 }
  0xb4   :  { %1399 = vperm.xlu0 %2269, %v1253_v55   ;;  %1404 = vperm.xlu1 %2270, %v1254_v56  }
  0xb8   :  { %1319 = vperm.xlu0 %2269, %v1237_v59   ;;  %1324 = vperm.xlu1 %2270, %v1238_v60  }
  0xbc   :  { %1409 = vperm.xlu0 %2269, %v1255_v63   ;;  %1414 = vperm.xlu1 %2270, %v1256_v0  }
  0xc0   :  { %1329 = vperm.xlu0 %2269, %v1239_v1   ;;  %1334 = vperm.xlu1 %2270, %v1240_v2  }
  0xdd   :  { %v2234_v15 = vpop.f32.mrb[0].mxu0  ;;  %v2250_v16 = vpop.f32.mrb[0].mxu1 }
  0xde   :  { %v434_v17 = vadd.f32 %v2234_v15, %v115_v47  ;;  %v498_v18 = vadd.f32 %v2250_v16, %v195_v41  ;;  %v425_v19 = vpop.f32.mrb[1].mxu0  ;;  %v489_v20 = vpop.f32.mrb[1].mxu1 }
  0xdf   :  { %v426_v21 = vadd.f32 %v425_v19, %v2757_v32  ;;  %v490_v22 = vadd.f32 %v489_v20, %v2755_v31  ;;  %v2235_v23 = vpop.f32.mrb[2].mxu0  ;;  %v2251_v24 = vpop.f32.mrb[2].mxu1 }
  0xe0   :  { %v437_v25 = vadd.f32 %v2235_v23, %v120_v48  ;;  %v501_v26 = vadd.f32 %v2251_v24, %v2781_v42  ;;  %v554_v27 = vmax.f32 %v434_v17, 0.0  ;;  %v570_v28 = vmax.f32 %v498_v18, 0.0  ;;  %v428_v29 = vpop.f32.mrb[3].mxu0  ;;  %v492_v30 = vpop.f32.mrb[3].mxu1 }
  0xe1   :  { %v429_v35 = vadd.f32 %v428_v29, %v2773_v38  ;;  %v493_v36 = vadd.f32 %v492_v30, %v2771_v37  ;;  %v552_v39 = vmax.f32 %v426_v21, 0.0  ;;  %v568_v40 = vmax.f32 %v490_v22, 0.0  ;;  %v2866_v32 = vpop.permute.xlu0 %164  ;;  %v2868_v31 = vpop.permute.xlu1 %169 }
  0xe2   :  { %v555_v33 = vmax.f32 %v437_v25, 0.0  ;;  %v571_v34 = vmax.f32 %v501_v26, 0.0 }
  0xe3   :  { %v553_v44 = vmax.f32 %v429_v35, 0.0  ;;  %v569_v42 = vmax.f32 %v493_v36, 0.0 }
  0xe4   :  { %v617_v41 = vpack.c.bf16 %v555_v33, %v554_v27  ;;  %v625_v43 = vpack.c.bf16 %v571_v34, %v570_v28 }
  0xe5   :  { %v2238_v45 = vpop.f32.mrb[4].mxu0  ;;  %v2254_v46 = vpop.f32.mrb[4].mxu1  ;;  %v616_v47 = vpack.c.bf16 %v553_v44, %v552_v39  ;;  %v624_v48 = vpack.c.bf16 %v569_v42, %v568_v40 }
  0xe6   :  { %v450_v49 = vadd.f32 %v2238_v45, %v135_v3  ;;  %v514_v50 = vadd.f32 %v2254_v46, %v215_v61  ;;  %v441_v53 = vpop.f32.mrb[5].mxu0  ;;  %v505_v38 = vpop.f32.mrb[5].mxu1 }
  0xe7   :  { %v442_v37 = vadd.f32 %v441_v53, %v2817_v57  ;;  %v506_v54 = vadd.f32 %v505_v38, %v2801_v51  ;;  %v2239_v55 = vpop.f32.mrb[6].mxu0  ;;  %v2255_v56 = vpop.f32.mrb[6].mxu1  ;;  %1984 = vmatprep.subr.bf16.mxu1 %v624_v48 }
  0xe8   :  { %v453_v59 = vadd.f32 %v2239_v55, %v140_v4  ;;  %v517_v60 = vadd.f32 %v2255_v56, %v2827_v62  ;;  %v558_v63 = vmax.f32 %v450_v49, 0.0  ;;  %v574_v0 = vmax.f32 %v514_v50, 0.0  ;;  %v444_v1 = vpop.f32.mrb[7].mxu0  ;;  %v508_v2 = vpop.f32.mrb[7].mxu1  ;;  %1985 = vmatpush3.bf16.msra.mxu1 %v616_v47 }
  0xe9   :  { %v445_v61 = vadd.f32 %v444_v1, %v2819_v58  ;;  %v509_v16 = vadd.f32 %v508_v2, %v2803_v52  ;;  %1986 = vmatprep.subr.bf16.mxu1 %v625_v43  ;;  %v556_v57 = vmax.f32 %v442_v37, 0.0  ;;  %v572_v51 = vmax.f32 %v506_v54, 0.0  ;;  %v255_v17 = vpop.permute.xlu0 %254  ;;  %v260_v18 = vpop.permute.xlu1 %259 }
  0xea   :  { %v559_v15 = vmax.f32 %v453_v59, 0.0  ;;  %v575_v3 = vmax.f32 %v517_v60, 0.0 }
  0xeb   :  { %v557_v62 = vmax.f32 %v445_v61, 0.0  ;;  %v573_v20 = vmax.f32 %v509_v16, 0.0 }
  0xec   :  { %v619_v4 = vpack.c.bf16 %v559_v15, %v558_v63  ;;  %v627_v19 = vpack.c.bf16 %v575_v3, %v574_v0  ;;  %1987 = vmatpush3.bf16.msra.mxu1 %v617_v41 }
  0xed   :  { %v2242_v21 = vpop.f32.mrb[8].mxu0  ;;  %v2258_v22 = vpop.f32.mrb[8].mxu1  ;;  %v618_v23 = vpack.c.bf16 %v557_v62, %v556_v57  ;;  %v626_v24 = vpack.c.bf16 %v573_v20, %v572_v51  ;;  %v2287_v62 = vld [vmem:[%s3253_s3] ss:$8 sps:$4 sm:$0xff]   ;;  %v2293_v20 = vld [vmem:[%s3253_s3 + $0x24] ss:$8 sps:$4 sm:$0xff]  }
  0xee   :  { %v466_v25 = vadd.f32 %v2242_v21, %v2853_v11  ;;  %v530_v58 = vadd.f32 %v2258_v22, %v2849_v9  ;;  %v457_v26 = vpop.f32.mrb[9].mxu0  ;;  %v521_v52 = vpop.f32.mrb[9].mxu1  ;;  %v2295_v21 = vld [vmem:[%s3253_s3 + $0x20] ss:$8 sps:$4 sm:$0xff]   ;;  %v2296_v22 = vld [vmem:[%s3253_s3 + $0x34] ss:$8 sps:$4 sm:$0xff]  }
  0xef   :  { %v458_v27 = vadd.f32 %v457_v26, %v2845_v7  ;;  %v522_v28 = vadd.f32 %v521_v52, %v2841_v5  ;;  %v2243_v29 = vpop.f32.mrb[10].mxu0  ;;  %v2259_v30 = vpop.f32.mrb[10].mxu1  ;;  %1988 = vmatprep.subr.bf16.mxu1 %v626_v24  ;;  %v2299_v24 = vld [vmem:[%s3253_s3 + $0x44] ss:$8 sps:$4 sm:$0xff]   ;;  %v2304_v26 = vld [vmem:[%s3253_s3 + $0x50] ss:$8 sps:$4 sm:$0xff]  }
  0xf0   :  { %v469_v33 = vadd.f32 %v2243_v29, %v2855_v12  ;;  %v533_v34 = vadd.f32 %v2259_v30, %v2851_v10  ;;  %v562_v35 = vmax.f32 %v466_v25, 0.0  ;;  %v578_v36 = vmax.f32 %v530_v58, 0.0  ;;  %v460_v39 = vpop.f32.mrb[11].mxu0  ;;  %v524_v40 = vpop.f32.mrb[11].mxu1  ;;  %1989 = vmatpush3.bf16.msra.mxu1 %v618_v23  ;;  %v2298_v23 = vld [vmem:[%s3253_s3 + $0x30] ss:$8 sps:$4 sm:$0xff]  }
  0xf1   :  { %v461_v41 = vadd.f32 %v460_v39, %v2847_v8  ;;  %v525_v7 = vadd.f32 %v524_v40, %v2843_v6  ;;  %1990 = vmatprep.subr.bf16.mxu1 %v627_v19  ;;  %v560_v5 = vmax.f32 %v458_v27, 0.0  ;;  %v576_v43 = vmax.f32 %v522_v28, 0.0  ;;  %v175_v44 = vpop.permute.xlu0 %174  ;;  %v180_v42 = vpop.permute.xlu1 %179  ;;  %v2301_v25 = vld [vmem:[%s3253_s3 + $0x40] ss:$8 sps:$4 sm:$0xff]   ;;  %v2302_v58 = vld [vmem:[%s3253_s3 + $0x54] ss:$8 sps:$4 sm:$0xff]  }
  0xf2   :  { %v563_v11 = vmax.f32 %v469_v33, 0.0  ;;  %v579_v9 = vmax.f32 %v533_v34, 0.0  ;;  %v2305_v52 = vld [vmem:[%s3253_s3 + $0x64] ss:$8 sps:$4 sm:$0xff]   ;;  %v2307_v27 = vld [vmem:[%s3253_s3 + $0x60] ss:$8 sps:$4 sm:$0xff]  }
  0xf3   :  { %v561_v10 = vmax.f32 %v461_v41, 0.0  ;;  %v577_v46 = vmax.f32 %v525_v7, 0.0  ;;  %v2308_v28 = vld [vmem:[%s3253_s3 + $0x74] ss:$8 sps:$4 sm:$0xff]   ;;  %v2310_v29 = vld [vmem:[%s3253_s3 + $0x70] ss:$8 sps:$4 sm:$0xff]  }
  0xf4   :  { %v621_v12 = vpack.c.bf16 %v563_v11, %v562_v35  ;;  %v629_v45 = vpack.c.bf16 %v579_v9, %v578_v36  ;;  %1991 = vmatpush3.bf16.msra.mxu1 %v619_v4  ;;  %v2311_v30 = vld [vmem:[%s3253_s3 + $0x84] ss:$8 sps:$4 sm:$0xff]   ;;  %v2313_v33 = vld [vmem:[%s3253_s3 + $0x80] ss:$8 sps:$4 sm:$0xff]   ;;  %v2314_v34 = vld [vmem:[%s3253_s3 + $0x94] ss:$8 sps:$4 sm:$0xff]  }
  0xf5   :  { %v2246_v47 = vpop.f32.mrb[12].mxu0  ;;  %v2262_v48 = vpop.f32.mrb[12].mxu1  ;;  %v620_v49 = vpack.c.bf16 %v561_v10, %v560_v5  ;;  %v628_v50 = vpack.c.bf16 %v577_v46, %v576_v43  ;;  %v2316_v35 = vld [vmem:[%s3253_s3 + $0x90] ss:$8 sps:$4 sm:$0xff]   ;;  %v2317_v36 = vld [vmem:[%s3253_s3 + $0xa4] ss:$8 sps:$4 sm:$0xff]  }
  0xf6   :  { %v482_v53 = vadd.f32 %v2246_v47, %v175_v44  ;;  %v546_v38 = vadd.f32 %v2262_v48, %v255_v17  ;;  %v473_v37 = vpop.f32.mrb[13].mxu0  ;;  %v537_v8 = vpop.f32.mrb[13].mxu1  ;;  %v2319_v39 = vld [vmem:[%s3253_s3 + $0xa0] ss:$8 sps:$4 sm:$0xff]   ;;  %v2320_v40 = vld [vmem:[%s3253_s3 + $0xb4] ss:$8 sps:$4 sm:$0xff]  }
  0xf7   :  { %v474_v6 = vadd.f32 %v473_v37, %v2866_v32  ;;  %v538_v54 = vadd.f32 %v537_v8, %v2857_v13  ;;  %v2247_v55 = vpop.f32.mrb[14].mxu0  ;;  %v2263_v56 = vpop.f32.mrb[14].mxu1  ;;  %1992 = vmatprep.subr.bf16.mxu1 %v628_v50  ;;  %v2322_v11 = vld [vmem:[%s3253_s3 + $0xb0] ss:$8 sps:$4 sm:$0xff]   ;;  %v2323_v9 = vld [vmem:[%s3253_s3 + $0xc4] ss:$8 sps:$4 sm:$0xff]  }
  0xf8   :  { %v485_v59 = vadd.f32 %v2247_v55, %v180_v42  ;;  %v549_v60 = vadd.f32 %v2263_v56, %v260_v18  ;;  %v566_v63 = vmax.f32 %v482_v53, 0.0  ;;  %v582_v0 = vmax.f32 %v546_v38, 0.0  ;;  %v476_v1 = vpop.f32.mrb[15].mxu0  ;;  %v540_v2 = vpop.f32.mrb[15].mxu1  ;;  %1993 = vmatpush3.bf16.msra.mxu1 %v620_v49  ;;  %v2325_v41 = vld [vmem:[%s3253_s3 + $0xc0] ss:$8 sps:$4 sm:$0xff]  }
  0xf9   :  { %v477_v61 = vadd.f32 %v476_v1, %v2868_v31  ;;  %v541_v16 = vadd.f32 %v540_v2, %v2859_v14  ;;  %1994 = vmatprep.subr.bf16.mxu1 %v629_v45  ;;  %v564_v32 = vmax.f32 %v474_v6, 0.0  ;;  %v580_v57 = vmax.f32 %v538_v54, 0.0  ;;  %v2290_v14 = vld [vmem:[%s3253_s3 + $0x14] ss:$8 sps:$4 sm:$0xff]   ;;  %v2292_v31 = vld [vmem:[%s3253_s3 + $0x10] ss:$8 sps:$4 sm:$0xff]   ;;  %v2980_v45 = vpop.permute.xlu0 %746  ;;  %v2982_v10 = vpop.permute.xlu1 %751 }
  0xfa   :  { %v567_v15 = vmax.f32 %v485_v59, 0.0  ;;  %v583_v3 = vmax.f32 %v549_v60, 0.0  ;;  %v2326_v7 = vld [vmem:[%s3253_s3 + $0xd4] ss:$8 sps:$4 sm:$0xff]   ;;  %v2328_v5 = vld [vmem:[%s3253_s3 + $0xd0] ss:$8 sps:$4 sm:$0xff]  }
  0xfb   :  { %v565_v17 = vmax.f32 %v477_v61, 0.0  ;;  %v581_v4 = vmax.f32 %v541_v16, 0.0  ;;  %v2329_v43 = vld [vmem:[%s3253_s3 + $0xe4] ss:$8 sps:$4 sm:$0xff]   ;;  %v2331_v44 = vld [vmem:[%s3253_s3 + $0xe0] ss:$8 sps:$4 sm:$0xff]  }
  0xfc   :  { %v623_v13 = vpack.c.bf16 %v567_v15, %v566_v63  ;;  %v631_v51 = vpack.c.bf16 %v583_v3, %v582_v0  ;;  %1995 = vmatpush3.bf16.msra.mxu1 %v621_v12  ;;  %v2332_v42 = vld [vmem:[%s3253_s3 + $0xf4] ss:$8 sps:$4 sm:$0xff]   ;;  %v2334_v12 = vld [vmem:[%s3253_s3 + $0xf0] ss:$8 sps:$4 sm:$0xff]   ;;  %v2337_v2 = vld [vmem:[%s3255_s5 + $0x4] ss:$8 sps:$4 sm:$0xff]  }
  0xfd   :  { %v622_v18 = vpack.c.bf16 %v565_v17, %v564_v32  ;;  %v630_v19 = vpack.c.bf16 %v581_v4, %v580_v57  ;;  %v667_v46 = vpop.permute.xlu0 %666  ;;  %v672_v47 = vpop.permute.xlu1 %671  ;;  %1609 = vmatprep.mubr.bf16.mxu0 %v2337_v2 }
  0xff   :  { %1996 = vmatprep.subr.bf16.mxu1 %v630_v19 }
 0x100   :  { %1997 = vmatpush3.bf16.msra.mxu1 %v622_v18 }
 0x101   :  { %1998 = vmatprep.subr.bf16.mxu1 %v631_v51  ;;  %v2984_v48 = vpop.permute.xlu0 %756  ;;  %v2986_v49 = vpop.permute.xlu1 %761 }
 0x104   :  { %1999 = vmatpush3.bf16.msra.mxu1 %v623_v13 }
 0x105   :  { %v677_v50 = vpop.permute.xlu0 %676  ;;  %v682_v53 = vpop.permute.xlu1 %681 }
 0x107   :  { %1017 = vmatmul.mubr.bf16.vlgmr.msra.gmra.mrb[16].mxu1 %v2287_v62 }
 0x108   :  { %1024 = vmatprep.mubr.bf16.mxu1 %v2290_v14 }
 0x109   :  { %v2988_v38 = vpop.permute.xlu0 %766  ;;  %v2990_v37 = vpop.permute.xlu1 %771 }
 0x10d   :  { %v687_v8 = vpop.permute.xlu0 %686  ;;  %v692_v54 = vpop.permute.xlu1 %691 }
 0x10f   :  { %1025 = vmatmul.mubr.bf16.gmra.mrb[20].mxu1 %v2292_v31 }
 0x110   :  { %1032 = vmatprep.mubr.bf16.mxu1 %v2293_v20 }
 0x111   :  { %v2992_v1 = vpop.permute.xlu0 %776  ;;  %v2997_v3 = vpop.permute.xlu1 %781 }
 0x115   :  { %v697_v4 = vpop.permute.xlu0 %696  ;;  %v702_v14 = vpop.permute.xlu1 %701 }
 0x117   :  { %1033 = vmatmul.mubr.bf16.gmra.mrb[24].mxu1 %v2295_v21 }
 0x118   :  { %1040 = vmatprep.mubr.bf16.mxu1 %v2296_v22 }
 0x11f   :  { %1041 = vmatmul.mubr.bf16.gmra.mrb[28].mxu1 %v2298_v23  ;;  %v3001_v23 = vpop.permute.xlu0 %786 }
 0x120   :  { %1048 = vmatprep.mubr.bf16.mxu1 %v2299_v24 }
 0x127   :  { %1049 = vmatmul.mubr.bf16.gmra.mrb[32].mxu1 %v2301_v25 }
 0x128   :  { %1056 = vmatprep.mubr.bf16.mxu1 %v2302_v58 }
 0x12f   :  { %1057 = vmatmul.mubr.bf16.gmra.mrb[36].mxu1 %v2304_v26 }
 0x130   :  { %1064 = vmatprep.mubr.bf16.mxu1 %v2305_v52  ;;  %v3005_v52 = vpop.permute.xlu1 %791 }
 0x137   :  { %1065 = vmatmul.mubr.bf16.gmra.mrb[40].mxu1 %v2307_v27 }
 0x138   :  { %1072 = vmatprep.mubr.bf16.mxu1 %v2308_v28 }
 0x13f   :  { %1073 = vmatmul.mubr.bf16.gmra.mrb[44].mxu1 %v2310_v29 }
 0x140   :  { %1080 = vmatprep.mubr.bf16.mxu1 %v2311_v30 }
 0x147   :  { %1081 = vmatmul.mubr.bf16.gmra.mrb[48].mxu1 %v2313_v33  ;;  %v707_v33 = vpop.permute.xlu0 %706 }
 0x148   :  { %1088 = vmatprep.mubr.bf16.mxu1 %v2314_v34 }
 0x14f   :  { %1089 = vmatmul.mubr.bf16.gmra.mrb[52].mxu1 %v2316_v35 }
 0x150   :  { %1096 = vmatprep.mubr.bf16.mxu1 %v2317_v36 }
 0x157   :  { %1097 = vmatmul.mubr.bf16.gmra.mrb[56].mxu1 %v2319_v39  ;;  %v712_v39 = vpop.permute.xlu1 %711 }
 0x158   :  { %1104 = vmatprep.mubr.bf16.mxu1 %v2320_v40 }
 0x15f   :  { %1105 = vmatmul.mubr.bf16.gmra.mrb[60].mxu1 %v2322_v11 }
 0x160   :  { %1112 = vmatprep.mubr.bf16.mxu1 %v2323_v9 }
 0x167   :  { %1113 = vmatmul.mubr.bf16.gmra.mrb[64].mxu1 %v2325_v41 }
 0x168   :  { %1120 = vmatprep.mubr.bf16.mxu1 %v2326_v7 }
 0x16f   :  { %1121 = vmatmul.mubr.bf16.gmra.mrb[68].mxu1 %v2328_v5 }
 0x170   :  { %1128 = vmatprep.mubr.bf16.mxu1 %v2329_v43 }
 0x177   :  { %1129 = vmatmul.mubr.bf16.gmra.mrb[72].mxu1 %v2331_v44  ;;  %v3009_v44 = vpop.permute.xlu0 %796 }
 0x178   :  { %1136 = vmatprep.mubr.bf16.mxu1 %v2332_v42 }
 0x17f   :  { %1137 = vmatmul.mubr.bf16.gmra.mrb[76].mxu1 %v2334_v12  ;;  %v3011_v12 = vpop.permute.xlu1 %801 }
 0x1da   :  { %v2000_v6 = vpop.f32.mrb[16].mxu1 }
 0x1db   :  { %v2001_v55 = vpop.f32.mrb[17].mxu1 }
 0x1dc   :  { %v2002_v56 = vadd.f32 %v2001_v55, %v2000_v6  ;;  %v2003_v59 = vpop.f32.mrb[18].mxu1  ;;  %v717_v55 = vpop.permute.xlu0 %716 }
 0x1dd   :  { %v2004_v60 = vpop.f32.mrb[19].mxu1 }
 0x1de   :  { %v1019_v63 = vadd.f32 %v2002_v56, %v667_v46  ;;  %v2005_v0 = vadd.f32 %v2004_v60, %v2003_v59 }
 0x1e0   :  { %v1022_v15 = vadd.f32 %v2005_v0, %v672_v47  ;;  %v1145_v61 = vmax.f32 %v1019_v63, 0.0  ;;  %v722_v63 = vpop.permute.xlu1 %721 }
 0x1e2   :  { %v1146_v16 = vmax.f32 %v1022_v15, 0.0  ;;  %v2006_v32 = vpop.f32.mrb[20].mxu1 }
 0x1e3   :  { %v2007_v57 = vpop.f32.mrb[21].mxu1 }
 0x1e4   :  { %v2999_v13 = vpack.c.bf16 %v1146_v16, %v1145_v61  ;;  %v2008_v51 = vadd.f32 %v2007_v57, %v2006_v32  ;;  %v2009_v17 = vpop.f32.mrb[22].mxu1  ;;  %v3015_v16 = vpop.permute.xlu0 %806 }
 0x1e5   :  { %v2010_v18 = vpop.f32.mrb[23].mxu1 }
 0x1e6   :  { %v1027_v19 = vadd.f32 %v2008_v51, %v677_v50  ;;  %v2011_v62 = vadd.f32 %v2010_v18, %v2009_v17 }
 0x1e8   :  { %v1030_v31 = vadd.f32 %v2011_v62, %v682_v53  ;;  %v1147_v20 = vmax.f32 %v1027_v19, 0.0 }
 0x1ea   :  { %v1148_v21 = vmax.f32 %v1030_v31, 0.0  ;;  %v2012_v22 = vpop.f32.mrb[24].mxu1  ;;  %v727_v31 = vpop.permute.xlu0 %726 }
 0x1eb   :  { %v2013_v24 = vpop.f32.mrb[25].mxu1 }
 0x1ec   :  { %v3003_v25 = vpack.c.bf16 %v1148_v21, %v1147_v20  ;;  %v2014_v58 = vadd.f32 %v2013_v24, %v2012_v22  ;;  %v2015_v26 = vpop.f32.mrb[26].mxu1 }
 0x1ed   :  { %v2016_v27 = vpop.f32.mrb[27].mxu1 }
 0x1ee   :  { %v1035_v28 = vadd.f32 %v2014_v58, %v687_v8  ;;  %v2017_v29 = vadd.f32 %v2016_v27, %v2015_v26 }
 0x1f0   :  { %v1038_v30 = vadd.f32 %v2017_v29, %v692_v54  ;;  %v1149_v34 = vmax.f32 %v1035_v28, 0.0 }
 0x1f2   :  { %v1150_v35 = vmax.f32 %v1038_v30, 0.0  ;;  %v2018_v36 = vpop.f32.mrb[28].mxu1 }
 0x1f3   :  { %v2019_v40 = vpop.f32.mrb[29].mxu1 }
 0x1f4   :  { %v3007_v11 = vpack.c.bf16 %v1150_v35, %v1149_v34  ;;  %v2020_v9 = vadd.f32 %v2019_v40, %v2018_v36  ;;  %v2021_v41 = vpop.f32.mrb[30].mxu1  ;;  %v3023_v34 = vpop.permute.xlu0 %816 }
 0x1f5   :  { %v2022_v7 = vpop.f32.mrb[31].mxu1 }
 0x1f6   :  { %v1043_v5 = vadd.f32 %v2020_v9, %v697_v4  ;;  %v2023_v43 = vadd.f32 %v2022_v7, %v2021_v41  ;;  %v3019_v4 = vpop.permute.xlu1 %811 }
 0x1f8   :  { %v1046_v42 = vadd.f32 %v2023_v43, %v702_v14  ;;  %v1151_v46 = vmax.f32 %v1043_v5, 0.0 }
 0x1fa   :  { %v1152_v47 = vmax.f32 %v1046_v42, 0.0  ;;  %v2024_v50 = vpop.f32.mrb[32].mxu1  ;;  %v732_v24 = vpop.permute.xlu1 %731 }
 0x1fb   :  { %v2025_v53 = vpop.f32.mrb[33].mxu1  ;;  %v737_v42 = vpop.permute.xlu0 %736 }
 0x1fc   :  { %v3013_v8 = vpack.c.bf16 %v1152_v47, %v1151_v46  ;;  %v2026_v6 = vadd.f32 %v2025_v53, %v2024_v50  ;;  %v2027_v54 = vpop.f32.mrb[34].mxu1 }
 0x1fd   :  { %v2028_v56 = vpop.f32.mrb[35].mxu1 }
 0x1fe   :  { %v1051_v59 = vadd.f32 %v2026_v6, %v707_v33  ;;  %v2029_v60 = vadd.f32 %v2028_v56, %v2027_v54  ;;  %v3025_v36 = vpop.permute.xlu1 %821 }
 0x200   :  { %v1054_v0 = vadd.f32 %v2029_v60, %v712_v39  ;;  %v1153_v2 = vmax.f32 %v1051_v59, 0.0 }
 0x202   :  { %v1154_v15 = vmax.f32 %v1054_v0, 0.0  ;;  %v2030_v61 = vpop.f32.mrb[36].mxu1  ;;  %v742_v53 = vpop.permute.xlu1 %741 }
 0x203   :  { %v2031_v32 = vpop.f32.mrb[37].mxu1 }
 0x204   :  { %v3017_v57 = vpack.c.bf16 %v1154_v15, %v1153_v2  ;;  %v2032_v51 = vadd.f32 %v2031_v32, %v2030_v61  ;;  %v2033_v17 = vpop.f32.mrb[38].mxu1 }
 0x205   :  { %v2034_v18 = vpop.f32.mrb[39].mxu1 }
 0x206   :  { %v1059_v19 = vadd.f32 %v2032_v51, %v717_v55  ;;  %v2035_v62 = vadd.f32 %v2034_v18, %v2033_v17 }
 0x208   :  { %v1062_v14 = vadd.f32 %v2035_v62, %v722_v63  ;;  %v1155_v20 = vmax.f32 %v1059_v19, 0.0 }
 0x20a   :  { %v1156_v21 = vmax.f32 %v1062_v14, 0.0  ;;  %v2036_v22 = vpop.f32.mrb[40].mxu1 }
 0x20b   :  { %v2037_v58 = vpop.f32.mrb[41].mxu1 }
 0x20c   :  { %v3021_v26 = vpack.c.bf16 %v1156_v21, %v1155_v20  ;;  %v2038_v27 = vadd.f32 %v2037_v58, %v2036_v22  ;;  %v2039_v28 = vpop.f32.mrb[42].mxu1 }
 0x20d   :  { %v2040_v29 = vpop.f32.mrb[43].mxu1 }
 0x20e   :  { %v1067_v30 = vadd.f32 %v2038_v27, %v727_v31  ;;  %v2041_v33 = vadd.f32 %v2040_v29, %v2039_v28 }
 0x210   :  { %v1070_v35 = vadd.f32 %v2041_v33, %v732_v24  ;;  %v1157_v39 = vmax.f32 %v1067_v30, 0.0 }
 0x212   :  { %v1158_v40 = vmax.f32 %v1070_v35, 0.0  ;;  %v2042_v9 = vpop.f32.mrb[44].mxu1 }
 0x213   :  { %v2043_v41 = vpop.f32.mrb[45].mxu1 }
 0x214   :  { %v3027_v7 = vpack.c.bf16 %v1158_v40, %v1157_v39  ;;  %v2044_v5 = vadd.f32 %v2043_v41, %v2042_v9  ;;  %v2045_v43 = vpop.f32.mrb[46].mxu1 }
 0x215   :  { %v2046_v46 = vpop.f32.mrb[47].mxu1 }
 0x216   :  { %v1075_v47 = vadd.f32 %v2044_v5, %v737_v42  ;;  %v2047_v50 = vadd.f32 %v2046_v46, %v2045_v43 }
 0x218   :  { %v1078_v6 = vadd.f32 %v2047_v50, %v742_v53  ;;  %v1159_v54 = vmax.f32 %v1075_v47, 0.0 }
 0x21a   :  { %v1160_v55 = vmax.f32 %v1078_v6, 0.0  ;;  %v2048_v56 = vpop.f32.mrb[48].mxu1 }
 0x21b   :  { %v2049_v59 = vpop.f32.mrb[49].mxu1 }
 0x21c   :  { %v3029_v60 = vpack.c.bf16 %v1160_v55, %v1159_v54  ;;  %v2050_v63 = vadd.f32 %v2049_v59, %v2048_v56  ;;  %v2051_v0 = vpop.f32.mrb[50].mxu1 }
 0x21d   :  { %v2052_v2 = vpop.f32.mrb[51].mxu1 }
 0x21e   :  { %v1083_v15 = vadd.f32 %v2050_v63, %v2980_v45  ;;  %v2053_v61 = vadd.f32 %v2052_v2, %v2051_v0 }
 0x220   :  { %v1086_v32 = vadd.f32 %v2053_v61, %v2982_v10  ;;  %v1161_v51 = vmax.f32 %v1083_v15, 0.0 }
 0x222   :  { %v1162_v17 = vmax.f32 %v1086_v32, 0.0  ;;  %v2054_v18 = vpop.f32.mrb[52].mxu1 }
 0x223   :  { %v2055_v19 = vpop.f32.mrb[53].mxu1 }
 0x224   :  { %v2056_v62 = vadd.f32 %v2055_v19, %v2054_v18  ;;  %v2057_v14 = vpop.f32.mrb[54].mxu1  ;;  %v1217_v31 = vpack.c.bf16 %v1162_v17, %v1161_v51 }
 0x225   :  { %v2058_v20 = vpop.f32.mrb[55].mxu1 }
 0x226   :  { %v1091_v21 = vadd.f32 %v2056_v62, %v2984_v48  ;;  %v2059_v22 = vadd.f32 %v2058_v20, %v2057_v14  ;;  %2096 = vmatprep.subr.bf16.mxu0 %v1217_v31 }
 0x227   :  { %2097 = vmatpush3.bf16.msra.mxu0 %v2999_v13 }
 0x228   :  { %v1094_v24 = vadd.f32 %v2059_v22, %v2986_v49  ;;  %v1163_v45 = vmax.f32 %v1091_v21, 0.0 }
 0x22a   :  { %v1164_v58 = vmax.f32 %v1094_v24, 0.0  ;;  %v2060_v27 = vpop.f32.mrb[56].mxu1 }
 0x22b   :  { %v2061_v10 = vpop.f32.mrb[57].mxu1 }
 0x22c   :  { %v2062_v28 = vadd.f32 %v2061_v10, %v2060_v27  ;;  %v2063_v29 = vpop.f32.mrb[58].mxu1  ;;  %v1218_v30 = vpack.c.bf16 %v1164_v58, %v1163_v45 }
 0x22d   :  { %v2064_v33 = vpop.f32.mrb[59].mxu1 }
 0x22e   :  { %v1099_v35 = vadd.f32 %v2062_v28, %v2988_v38  ;;  %v2065_v39 = vadd.f32 %v2064_v33, %v2063_v29  ;;  %2098 = vmatprep.subr.bf16.mxu0 %v1218_v30 }
 0x22f   :  { %2099 = vmatpush3.bf16.msra.mxu0 %v3003_v25 }
 0x230   :  { %v1102_v48 = vadd.f32 %v2065_v39, %v2990_v37  ;;  %v1165_v40 = vmax.f32 %v1099_v35, 0.0 }
 0x232   :  { %v1166_v13 = vmax.f32 %v1102_v48, 0.0  ;;  %v2066_v9 = vpop.f32.mrb[60].mxu1  ;;  %v2344_v48 = vld [vmem:[%s3255_s5 + $0x34] ss:$8 sps:$4 sm:$0xff]  }
 0x233   :  { %v2067_v49 = vpop.f32.mrb[61].mxu1 }
 0x234   :  { %v2068_v41 = vadd.f32 %v2067_v49, %v2066_v9  ;;  %v2069_v5 = vpop.f32.mrb[62].mxu1  ;;  %v1219_v43 = vpack.c.bf16 %v1166_v13, %v1165_v40  ;;  %v2346_v40 = vld [vmem:[%s3255_s5 + $0x30] ss:$8 sps:$4 sm:$0xff]   ;;  %v2347_v13 = vld [vmem:[%s3255_s5 + $0x44] ss:$8 sps:$4 sm:$0xff]  }
 0x235   :  { %v2070_v42 = vpop.f32.mrb[63].mxu1  ;;  %v2349_v9 = vld [vmem:[%s3255_s5 + $0x40] ss:$8 sps:$4 sm:$0xff]   ;;  %v2350_v49 = vld [vmem:[%s3255_s5 + $0x54] ss:$8 sps:$4 sm:$0xff]  }
 0x236   :  { %v1107_v46 = vadd.f32 %v2068_v41, %v2992_v1  ;;  %v2071_v47 = vadd.f32 %v2070_v42, %v2069_v5  ;;  %2100 = vmatprep.subr.bf16.mxu0 %v1219_v43  ;;  %v2352_v41 = vld [vmem:[%s3255_s5 + $0x50] ss:$8 sps:$4 sm:$0xff]   ;;  %v2353_v5 = vld [vmem:[%s3255_s5 + $0x64] ss:$8 sps:$4 sm:$0xff]   ;;  %v2355_v43 = vld [vmem:[%s3255_s5 + $0x60] ss:$8 sps:$4 sm:$0xff]  }
 0x237   :  { %2101 = vmatpush3.bf16.msra.mxu0 %v3007_v11  ;;  %v2356_v42 = vld [vmem:[%s3255_s5 + $0x74] ss:$8 sps:$4 sm:$0xff]  }
 0x238   :  { %v1110_v38 = vadd.f32 %v2071_v47, %v2997_v3  ;;  %v1167_v50 = vmax.f32 %v1107_v46, 0.0  ;;  %v2358_v46 = vld [vmem:[%s3255_s5 + $0x70] ss:$8 sps:$4 sm:$0xff]   ;;  %v2359_v47 = vld [vmem:[%s3255_s5 + $0x84] ss:$8 sps:$4 sm:$0xff]  }
 0x23a   :  { %v1168_v25 = vmax.f32 %v1110_v38, 0.0  ;;  %v2072_v53 = vpop.f32.mrb[64].mxu1  ;;  %v2361_v38 = vld [vmem:[%s3255_s5 + $0x80] ss:$8 sps:$4 sm:$0xff]  }
 0x23b   :  { %v2073_v37 = vpop.f32.mrb[65].mxu1 }
 0x23c   :  { %v2074_v6 = vadd.f32 %v2073_v37, %v2072_v53  ;;  %v2075_v54 = vpop.f32.mrb[66].mxu1  ;;  %v1220_v55 = vpack.c.bf16 %v1168_v25, %v1167_v50  ;;  %v2362_v50 = vld [vmem:[%s3255_s5 + $0x94] ss:$8 sps:$4 sm:$0xff]   ;;  %v2364_v25 = vld [vmem:[%s3255_s5 + $0x90] ss:$8 sps:$4 sm:$0xff]  }
 0x23d   :  { %v2076_v56 = vpop.f32.mrb[67].mxu1  ;;  %v2365_v53 = vld [vmem:[%s3255_s5 + $0xa4] ss:$8 sps:$4 sm:$0xff]   ;;  %v2367_v37 = vld [vmem:[%s3255_s5 + $0xa0] ss:$8 sps:$4 sm:$0xff]  }
 0x23e   :  { %v1115_v59 = vadd.f32 %v2074_v6, %v3001_v23  ;;  %v2077_v63 = vadd.f32 %v2076_v56, %v2075_v54  ;;  %2102 = vmatprep.subr.bf16.mxu0 %v1220_v55  ;;  %v2368_v6 = vld [vmem:[%s3255_s5 + $0xb4] ss:$8 sps:$4 sm:$0xff]   ;;  %v2370_v54 = vld [vmem:[%s3255_s5 + $0xb0] ss:$8 sps:$4 sm:$0xff]   ;;  %v2371_v55 = vld [vmem:[%s3255_s5 + $0xc4] ss:$8 sps:$4 sm:$0xff]  }
 0x23f   :  { %2103 = vmatpush3.bf16.msra.mxu0 %v3013_v8  ;;  %v2373_v56 = vld [vmem:[%s3255_s5 + $0xc0] ss:$8 sps:$4 sm:$0xff]  }
 0x240   :  { %v1118_v1 = vadd.f32 %v2077_v63, %v3005_v52  ;;  %v1169_v0 = vmax.f32 %v1115_v59, 0.0  ;;  %v2374_v59 = vld [vmem:[%s3255_s5 + $0xd4] ss:$8 sps:$4 sm:$0xff]   ;;  %v2376_v63 = vld [vmem:[%s3255_s5 + $0xd0] ss:$8 sps:$4 sm:$0xff]  }
 0x242   :  { %v1170_v11 = vmax.f32 %v1118_v1, 0.0  ;;  %v2078_v2 = vpop.f32.mrb[68].mxu1  ;;  %v2377_v1 = vld [vmem:[%s3255_s5 + $0xe4] ss:$8 sps:$4 sm:$0xff]  }
 0x243   :  { %v2079_v3 = vpop.f32.mrb[69].mxu1 }
 0x244   :  { %v2080_v15 = vadd.f32 %v2079_v3, %v2078_v2  ;;  %v2081_v61 = vpop.f32.mrb[70].mxu1  ;;  %v1221_v32 = vpack.c.bf16 %v1170_v11, %v1169_v0  ;;  %v2379_v0 = vld [vmem:[%s3255_s5 + $0xe0] ss:$8 sps:$4 sm:$0xff]   ;;  %v2380_v11 = vld [vmem:[%s3255_s5 + $0xf4] ss:$8 sps:$4 sm:$0xff]   ;;  %v3148_v3 = vpop.permute.xlu0 %1339 }
 0x245   :  { %v2082_v51 = vpop.f32.mrb[71].mxu1  ;;  %v2382_v2 = vld [vmem:[%s3255_s5 + $0xf0] ss:$8 sps:$4 sm:$0xff]  }
 0x246   :  { %v1123_v17 = vadd.f32 %v2080_v15, %v3009_v44  ;;  %v2083_v18 = vadd.f32 %v2082_v51, %v2081_v61  ;;  %2104 = vmatprep.subr.bf16.mxu0 %v1221_v32  ;;  %v3150_v15 = vpop.permute.xlu1 %1344 }
 0x247   :  { %2105 = vmatpush3.bf16.msra.mxu0 %v3017_v57 }
 0x248   :  { %v1126_v23 = vadd.f32 %v2083_v18, %v3011_v12  ;;  %v1171_v19 = vmax.f32 %v1123_v17, 0.0  ;;  %v1260_v61 = vpop.permute.xlu0 %1259 }
 0x24a   :  { %v1172_v8 = vmax.f32 %v1126_v23, 0.0  ;;  %v2084_v62 = vpop.f32.mrb[72].mxu1  ;;  %v1265_v32 = vpop.permute.xlu1 %1264 }
 0x24b   :  { %v2085_v52 = vpop.f32.mrb[73].mxu1 }
 0x24c   :  { %v2086_v14 = vadd.f32 %v2085_v52, %v2084_v62  ;;  %v2087_v31 = vpop.f32.mrb[74].mxu1  ;;  %v1222_v20 = vpack.c.bf16 %v1172_v8, %v1171_v19  ;;  %v3152_v51 = vpop.permute.xlu0 %1349  ;;  %v2408_v52 = vmov 1966171168  }
 0x24d   :  { %v2088_v21 = vpop.f32.mrb[75].mxu1 }
 0x24e   :  { %v1131_v22 = vadd.f32 %v2086_v14, %v3015_v16  ;;  %v2089_v24 = vadd.f32 %v2088_v21, %v2087_v31  ;;  %2106 = vmatprep.subr.bf16.mxu0 %v1222_v20  ;;  %v3154_v17 = vpop.permute.xlu1 %1354  ;;  %v1799_v14 = vunpack.c.l.s4 %v2408_v52  ;;  %v1801_v31 = vlaneseq }
 0x24f   :  { %2107 = vmatpush3.bf16.msra.mxu0 %v3021_v26 }
 0x250   :  { %v1134_v44 = vadd.f32 %v2089_v24, %v3019_v4  ;;  %v1173_v45 = vmax.f32 %v1131_v22, 0.0  ;;  %v2335_v4 = vld [vmem:[%s3255_s5] ss:$8 sps:$4 sm:$0xff]   ;;  %v1270_v18 = vpop.permute.xlu0 %1269  ;;  %v1800_v24 = vunpack.c.0.s8 %v1799_v14 }
 0x252   :  { %v1174_v57 = vmax.f32 %v1134_v44, 0.0  ;;  %v2090_v58 = vpop.f32.mrb[76].mxu1  ;;  %v1275_v23 = vpop.permute.xlu1 %1274  ;;  %v1802_v44 = vshrl.u32 %v1801_v31, 7 }
 0x253   :  { %v2091_v12 = vpop.f32.mrb[77].mxu1 }
 0x254   :  { %v2092_v27 = vadd.f32 %v2091_v12, %v2090_v58  ;;  %v2093_v10 = vpop.f32.mrb[78].mxu1  ;;  %v1223_v28 = vpack.c.bf16 %v1174_v57, %v1173_v45  ;;  %v3156_v19 = vpop.permute.xlu0 %1359  ;;  %v3163_v58 = vld.sshfl [vmem:[%s3257_s7] sm:$0x11 pattern:$0x75316420] }
 0x255   :  { %v2094_v29 = vpop.f32.mrb[79].mxu1 }
 0x256   :  { %v1139_v30 = vadd.f32 %v2092_v27, %v3023_v34  ;;  %v2095_v33 = vadd.f32 %v2094_v29, %v2093_v10  ;;  %2108 = vmatprep.subr.bf16.mxu0 %v1223_v28  ;;  %v2338_v34 = vld [vmem:[%s3255_s5 + $0x14] ss:$8 sps:$4 sm:$0xff]   ;;  %v3158_v8 = vpop.permute.xlu1 %1364  ;;  %v1797_v27 = vcombine.high %v3163_v58, %v3163_v58  ;;  %v3167_v10 = vsub.s32 %v1800_v24, %v1802_v44 }
 0x257   :  { %2109 = vmatpush3.bf16.msra.mxu0 %v3027_v7  ;;  %v2341_v7 = vld [vmem:[%s3255_s5 + $0x24] ss:$8 sps:$4 sm:$0xff]  }
 0x258   :  { %v1142_v16 = vadd.f32 %v2095_v33, %v3025_v36  ;;  %v1175_v35 = vmax.f32 %v1139_v30, 0.0  ;;  %v2340_v36 = vld [vmem:[%s3255_s5 + $0x10] ss:$8 sps:$4 sm:$0xff]   ;;  %v1280_v62 = vpop.permute.xlu0 %1279  ;;  %v1804_v33 = vrot.slane %v3163_v58, %v3167_v10 }
 0x25a   :  { %v1176_v26 = vmax.f32 %v1142_v16, 0.0  ;;  %v1285_v21 = vpop.permute.xlu1 %1284  ;;  %v1811_v16 = vrot.slane %v1797_v27, %v3167_v10 }
 0x25c   :  { %v1224_v39 = vpack.c.bf16 %v1176_v26, %v1175_v35  ;;  %v3169_v30 = vpop.permute.xlu0 %1369  ;;  %1846 = vmatprep.mubr.bf16.mxu1 %v1811_v16 }
 0x25e   :  { %2110 = vmatprep.subr.bf16.mxu0 %v1224_v39  ;;  %v3174_v26 = vpop.permute.xlu1 %1374 }
 0x25f   :  { %2111 = vmatpush3.bf16.msra.mxu0 %v3029_v60  ;;  %v2343_v60 = vld [vmem:[%s3255_s5 + $0x20] ss:$8 sps:$4 sm:$0xff]  }
 0x262   :  { %1610 = vmatmul.mubr.bf16.vlgmr.msra.gmra.mrb[16].mxu0 %v2335_v4 }
 0x263   :  { %1617 = vmatprep.mubr.bf16.mxu0 %v2338_v34 }
 0x26a   :  { %1618 = vmatmul.mubr.bf16.gmra.mrb[20].mxu0 %v2340_v36 }
 0x26b   :  { %1625 = vmatprep.mubr.bf16.mxu0 %v2341_v7 }
 0x272   :  { %1626 = vmatmul.mubr.bf16.gmra.mrb[24].mxu0 %v2343_v60 }
 0x273   :  { %1633 = vmatprep.mubr.bf16.mxu0 %v2344_v48 }
 0x27a   :  { %1634 = vmatmul.mubr.bf16.gmra.mrb[28].mxu0 %v2346_v40  ;;  %v1290_v40 = vpop.permute.xlu0 %1289 }
 0x27b   :  { %1641 = vmatprep.mubr.bf16.mxu0 %v2347_v13 }
 0x282   :  { %1642 = vmatmul.mubr.bf16.gmra.mrb[32].mxu0 %v2349_v9 }
 0x283   :  { %1649 = vmatprep.mubr.bf16.mxu0 %v2350_v49 }
 0x28a   :  { %1650 = vmatmul.mubr.bf16.gmra.mrb[36].mxu0 %v2352_v41  ;;  %v1295_v41 = vpop.permute.xlu1 %1294 }
 0x28b   :  { %1657 = vmatprep.mubr.bf16.mxu0 %v2353_v5 }
 0x292   :  { %1658 = vmatmul.mubr.bf16.gmra.mrb[40].mxu0 %v2355_v43 }
 0x293   :  { %1665 = vmatprep.mubr.bf16.mxu0 %v2356_v42 }
 0x29a   :  { %1666 = vmatmul.mubr.bf16.gmra.mrb[44].mxu0 %v2358_v46 }
 0x29b   :  { %1673 = vmatprep.mubr.bf16.mxu0 %v2359_v47  ;;  %v3178_v47 = vpop.permute.xlu0 %1379 }
 0x2a2   :  { %1674 = vmatmul.mubr.bf16.gmra.mrb[48].mxu0 %v2361_v38 }
 0x2a3   :  { %1681 = vmatprep.mubr.bf16.mxu0 %v2362_v50 }
 0x2aa   :  { %1682 = vmatmul.mubr.bf16.gmra.mrb[52].mxu0 %v2364_v25 }
 0x2ab   :  { %1689 = vmatprep.mubr.bf16.mxu0 %v2365_v53 }
 0x2b2   :  { %1690 = vmatmul.mubr.bf16.gmra.mrb[56].mxu0 %v2367_v37  ;;  %v3182_v37 = vpop.permute.xlu1 %1384 }
 0x2b3   :  { %1697 = vmatprep.mubr.bf16.mxu0 %v2368_v6 }
 0x2ba   :  { %1698 = vmatmul.mubr.bf16.gmra.mrb[60].mxu0 %v2370_v54 }
 0x2bb   :  { %1705 = vmatprep.mubr.bf16.mxu0 %v2371_v55 }
 0x2c2   :  { %1706 = vmatmul.mubr.bf16.gmra.mrb[64].mxu0 %v2373_v56 }
 0x2c3   :  { %1713 = vmatprep.mubr.bf16.mxu0 %v2374_v59  ;;  %v1300_v59 = vpop.permute.xlu0 %1299 }
 0x2c7   :  { %v3186_v31 = vpop.permute.xlu0 %1389 }
 0x2ca   :  { %1714 = vmatmul.mubr.bf16.gmra.mrb[68].mxu0 %v2376_v63 }
 0x2cb   :  { %1721 = vmatprep.mubr.bf16.mxu0 %v2377_v1  ;;  %v1310_v27 = vpop.permute.xlu0 %1309 }
 0x2d2   :  { %1722 = vmatmul.mubr.bf16.gmra.mrb[72].mxu0 %v2379_v0 }
 0x2d3   :  { %1729 = vmatprep.mubr.bf16.mxu0 %v2380_v11  ;;  %v1305_v11 = vpop.permute.xlu1 %1304 }
 0x2da   :  { %1730 = vmatmul.mubr.bf16.gmra.mrb[76].mxu0 %v2382_v2 }
 0x335   :  { %v2112_v20 = vpop.f32.mrb[16].mxu0 }
 0x336   :  { %v2113_v22 = vpop.f32.mrb[17].mxu0 }
 0x337   :  { %v2114_v45 = vadd.f32 %v2113_v22, %v2112_v20  ;;  %v2115_v57 = vpop.f32.mrb[18].mxu0  ;;  %v3188_v22 = vpop.permute.xlu1 %1394 }
 0x338   :  { %v2116_v12 = vpop.f32.mrb[19].mxu0 }
 0x339   :  { %v1612_v28 = vadd.f32 %v2114_v45, %v1260_v61  ;;  %v2117_v29 = vadd.f32 %v2116_v12, %v2115_v57 }
 0x33b   :  { %v1615_v35 = vadd.f32 %v2117_v29, %v1265_v32  ;;  %v1738_v39 = vmax.f32 %v1612_v28, 0.0 }
 0x33d   :  { %v1739_v4 = vmax.f32 %v1615_v35, 0.0  ;;  %v2118_v34 = vpop.f32.mrb[20].mxu0  ;;  %v1315_v35 = vpop.permute.xlu1 %1314 }
 0x33e   :  { %v2119_v36 = vpop.f32.mrb[21].mxu0 }
 0x33f   :  { %v3176_v7 = vpack.c.bf16 %v1739_v4, %v1738_v39  ;;  %v2120_v60 = vadd.f32 %v2119_v36, %v2118_v34  ;;  %v2121_v48 = vpop.f32.mrb[22].mxu0 }
 0x340   :  { %v2122_v13 = vpop.f32.mrb[23].mxu0 }
 0x341   :  { %v1620_v9 = vadd.f32 %v2120_v60, %v1270_v18  ;;  %v2123_v49 = vadd.f32 %v2122_v13, %v2121_v48  ;;  %v3192_v60 = vpop.permute.xlu0 %1399 }
 0x343   :  { %v1623_v5 = vadd.f32 %v2123_v49, %v1275_v23  ;;  %v1740_v43 = vmax.f32 %v1620_v9, 0.0  ;;  %v3196_v49 = vpop.permute.xlu1 %1404 }
 0x345   :  { %v1741_v42 = vmax.f32 %v1623_v5, 0.0  ;;  %v2124_v46 = vpop.f32.mrb[24].mxu0 }
 0x346   :  { %v2125_v38 = vpop.f32.mrb[25].mxu0 }
 0x347   :  { %v3180_v50 = vpack.c.bf16 %v1741_v42, %v1740_v43  ;;  %v2126_v25 = vadd.f32 %v2125_v38, %v2124_v46  ;;  %v2127_v53 = vpop.f32.mrb[26].mxu0  ;;  %v1320_v46 = vpop.permute.xlu0 %1319 }
 0x348   :  { %v2128_v6 = vpop.f32.mrb[27].mxu0 }
 0x349   :  { %v1628_v54 = vadd.f32 %v2126_v25, %v1280_v62  ;;  %v2129_v55 = vadd.f32 %v2128_v6, %v2127_v53  ;;  %v1325_v6 = vpop.permute.xlu1 %1324 }
 0x34b   :  { %v1631_v56 = vadd.f32 %v2129_v55, %v1285_v21  ;;  %v1742_v63 = vmax.f32 %v1628_v54, 0.0 }
 0x34d   :  { %v1743_v1 = vmax.f32 %v1631_v56, 0.0  ;;  %v2130_v0 = vpop.f32.mrb[28].mxu0 }
 0x34e   :  { %v2131_v2 = vpop.f32.mrb[29].mxu0 }
 0x34f   :  { %v3184_v61 = vpack.c.bf16 %v1743_v1, %v1742_v63  ;;  %v2132_v32 = vadd.f32 %v2131_v2, %v2130_v0  ;;  %v2133_v18 = vpop.f32.mrb[30].mxu0 }
 0x350   :  { %v2134_v23 = vpop.f32.mrb[31].mxu0 }
 0x351   :  { %v1636_v52 = vadd.f32 %v2132_v32, %v1290_v40  ;;  %v2135_v14 = vadd.f32 %v2134_v23, %v2133_v18  ;;  %v3202_v32 = vpop.permute.xlu1 %1414 }
 0x353   :  { %v1639_v20 = vadd.f32 %v2135_v14, %v1295_v41  ;;  %v1744_v62 = vmax.f32 %v1636_v52, 0.0 }
 0x355   :  { %v1745_v21 = vmax.f32 %v1639_v20, 0.0  ;;  %v2136_v24 = vpop.f32.mrb[32].mxu0 }
 0x356   :  { %v2137_v44 = vpop.f32.mrb[33].mxu0 }
 0x357   :  { %v3190_v45 = vpack.c.bf16 %v1745_v21, %v1744_v62  ;;  %v2138_v57 = vadd.f32 %v2137_v44, %v2136_v24  ;;  %v2139_v12 = vpop.f32.mrb[34].mxu0 }
 0x358   :  { %v2140_v28 = vpop.f32.mrb[35].mxu0 }
 0x359   :  { %v1644_v29 = vadd.f32 %v2138_v57, %v1300_v59  ;;  %v2141_v16 = vadd.f32 %v2140_v28, %v2139_v12 }
 0x35b   :  { %v1647_v39 = vadd.f32 %v2141_v16, %v1305_v11  ;;  %v1746_v4 = vmax.f32 %v1644_v29, 0.0  ;;  %v3200_v11 = vpop.permute.xlu0 %1409 }
 0x35d   :  { %v1747_v34 = vmax.f32 %v1647_v39, 0.0  ;;  %v2142_v36 = vpop.f32.mrb[36].mxu0 }
 0x35e   :  { %v2143_v48 = vpop.f32.mrb[37].mxu0 }
 0x35f   :  { %v3194_v40 = vpack.c.bf16 %v1747_v34, %v1746_v4  ;;  %v2144_v13 = vadd.f32 %v2143_v48, %v2142_v36  ;;  %v2145_v9 = vpop.f32.mrb[38].mxu0  ;;  %v1330_v24 = vpop.permute.xlu0 %1329 }
 0x360   :  { %v2146_v41 = vpop.f32.mrb[39].mxu0 }
 0x361   :  { %v1652_v5 = vadd.f32 %v2144_v13, %v1310_v27  ;;  %v2147_v43 = vadd.f32 %v2146_v41, %v2145_v9  ;;  %v1335_v27 = vpop.permute.xlu1 %1334 }
 0x363   :  { %v1655_v42 = vadd.f32 %v2147_v43, %v1315_v35  ;;  %v1748_v38 = vmax.f32 %v1652_v5, 0.0 }
 0x365   :  { %v1749_v25 = vmax.f32 %v1655_v42, 0.0  ;;  %v2148_v53 = vpop.f32.mrb[40].mxu0 }
 0x366   :  { %v2149_v54 = vpop.f32.mrb[41].mxu0 }
 0x367   :  { %v3198_v55 = vpack.c.bf16 %v1749_v25, %v1748_v38  ;;  %v2150_v56 = vadd.f32 %v2149_v54, %v2148_v53  ;;  %v2151_v59 = vpop.f32.mrb[42].mxu0 }
 0x368   :  { %v2152_v63 = vpop.f32.mrb[43].mxu0 }
 0x369   :  { %v1660_v1 = vadd.f32 %v2150_v56, %v1320_v46  ;;  %v2153_v0 = vadd.f32 %v2152_v63, %v2151_v59 }
 0x36b   :  { %v1663_v2 = vadd.f32 %v2153_v0, %v1325_v6  ;;  %v1750_v18 = vmax.f32 %v1660_v1, 0.0 }
 0x36d   :  { %v1751_v23 = vmax.f32 %v1663_v2, 0.0  ;;  %v2154_v52 = vpop.f32.mrb[44].mxu0 }
 0x36e   :  { %v2155_v14 = vpop.f32.mrb[45].mxu0 }
 0x36f   :  { %v3204_v20 = vpack.c.bf16 %v1751_v23, %v1750_v18  ;;  %v2156_v62 = vadd.f32 %v2155_v14, %v2154_v52  ;;  %v2157_v21 = vpop.f32.mrb[46].mxu0 }
 0x370   :  { %v2158_v44 = vpop.f32.mrb[47].mxu0 }
 0x371   :  { %v1668_v57 = vadd.f32 %v2156_v62, %v1330_v24  ;;  %v2159_v12 = vadd.f32 %v2158_v44, %v2157_v21 }
 0x373   :  { %v1671_v28 = vadd.f32 %v2159_v12, %v1335_v27  ;;  %v1752_v29 = vmax.f32 %v1668_v57, 0.0 }
 0x375   :  { %v1753_v16 = vmax.f32 %v1671_v28, 0.0  ;;  %v2160_v35 = vpop.f32.mrb[48].mxu0 }
 0x376   :  { %v2161_v39 = vpop.f32.mrb[49].mxu0 }
 0x377   :  { %v3206_v4 = vpack.c.bf16 %v1753_v16, %v1752_v29  ;;  %v2162_v34 = vadd.f32 %v2161_v39, %v2160_v35  ;;  %v2163_v36 = vpop.f32.mrb[50].mxu0 }
 0x378   :  { %v2164_v48 = vpop.f32.mrb[51].mxu0 }
 0x379   :  { %v1676_v13 = vadd.f32 %v2162_v34, %v3148_v3  ;;  %v2165_v9 = vadd.f32 %v2164_v48, %v2163_v36 }
 0x37b   :  { %v1679_v41 = vadd.f32 %v2165_v9, %v3150_v15  ;;  %v1754_v5 = vmax.f32 %v1676_v13, 0.0 }
 0x37d   :  { %v1755_v43 = vmax.f32 %v1679_v41, 0.0  ;;  %v2166_v42 = vpop.f32.mrb[52].mxu0 }
 0x37e   :  { %v2167_v46 = vpop.f32.mrb[53].mxu0 }
 0x37f   :  { %v2168_v38 = vadd.f32 %v2167_v46, %v2166_v42  ;;  %v2169_v25 = vpop.f32.mrb[54].mxu0  ;;  %v1779_v53 = vpack.c.bf16 %v1755_v43, %v1754_v5 }
 0x380   :  { %v2170_v6 = vpop.f32.mrb[55].mxu0 }
 0x381   :  { %v1684_v54 = vadd.f32 %v2168_v38, %v3152_v51  ;;  %v2171_v56 = vadd.f32 %v2170_v6, %v2169_v25  ;;  %2208 = vmatprep.subr.bf16.mxu1 %v1779_v53 }
 0x382   :  { %2209 = vmatpush3.bf16.msra.mxu1 %v3176_v7 }
 0x383   :  { %v1687_v59 = vadd.f32 %v2171_v56, %v3154_v17  ;;  %v1756_v3 = vmax.f32 %v1684_v54, 0.0 }
 0x385   :  { %v1757_v63 = vmax.f32 %v1687_v59, 0.0  ;;  %v2172_v1 = vpop.f32.mrb[56].mxu0 }
 0x386   :  { %v2173_v15 = vpop.f32.mrb[57].mxu0 }
 0x387   :  { %v2174_v0 = vadd.f32 %v2173_v15, %v2172_v1  ;;  %v2175_v2 = vpop.f32.mrb[58].mxu0  ;;  %v1780_v18 = vpack.c.bf16 %v1757_v63, %v1756_v3 }
 0x388   :  { %v2176_v23 = vpop.f32.mrb[59].mxu0 }
 0x389   :  { %v1692_v52 = vadd.f32 %v2174_v0, %v3156_v19  ;;  %v2177_v14 = vadd.f32 %v2176_v23, %v2175_v2  ;;  %2210 = vmatprep.subr.bf16.mxu1 %v1780_v18 }
 0x38a   :  { %2211 = vmatpush3.bf16.msra.mxu1 %v3180_v50 }
 0x38b   :  { %v1695_v51 = vadd.f32 %v2177_v14, %v3158_v8  ;;  %v1758_v62 = vmax.f32 %v1692_v52, 0.0 }
 0x38d   :  { %v1759_v7 = vmax.f32 %v1695_v51, 0.0  ;;  %v2178_v21 = vpop.f32.mrb[60].mxu0 }
 0x38e   :  { %v2179_v17 = vpop.f32.mrb[61].mxu0 }
 0x38f   :  { %v2180_v24 = vadd.f32 %v2179_v17, %v2178_v21  ;;  %v2181_v44 = vpop.f32.mrb[62].mxu0  ;;  %v1781_v57 = vpack.c.bf16 %v1759_v7, %v1758_v62 }
 0x390   :  { %v2182_v12 = vpop.f32.mrb[63].mxu0 }
 0x391   :  { %v1700_v27 = vadd.f32 %v2180_v24, %v3169_v30  ;;  %v2183_v28 = vadd.f32 %v2182_v12, %v2181_v44  ;;  %2212 = vmatprep.subr.bf16.mxu1 %v1781_v57 }
 0x392   :  { %2213 = vmatpush3.bf16.msra.mxu1 %v3184_v61 }
 0x393   :  { %v1703_v19 = vadd.f32 %v2183_v28, %v3174_v26  ;;  %v1760_v29 = vmax.f32 %v1700_v27, 0.0 }
 0x395   :  { %v1761_v50 = vmax.f32 %v1703_v19, 0.0  ;;  %v2184_v16 = vpop.f32.mrb[64].mxu0 }
 0x396   :  { %v2185_v8 = vpop.f32.mrb[65].mxu0 }
 0x397   :  { %v2186_v35 = vadd.f32 %v2185_v8, %v2184_v16  ;;  %v2187_v39 = vpop.f32.mrb[66].mxu0  ;;  %v1782_v34 = vpack.c.bf16 %v1761_v50, %v1760_v29 }
 0x398   :  { %v2188_v36 = vpop.f32.mrb[67].mxu0 }
 0x399   :  { %v1708_v48 = vadd.f32 %v2186_v35, %v3178_v47  ;;  %v2189_v13 = vadd.f32 %v2188_v36, %v2187_v39  ;;  %2214 = vmatprep.subr.bf16.mxu1 %v1782_v34 }
 0x39a   :  { %2215 = vmatpush3.bf16.msra.mxu1 %v3190_v45 }
 0x39b   :  { %v1711_v30 = vadd.f32 %v2189_v13, %v3182_v37  ;;  %v1762_v9 = vmax.f32 %v1708_v48, 0.0 }
 0x39d   :  { %v1763_v61 = vmax.f32 %v1711_v30, 0.0  ;;  %v2190_v41 = vpop.f32.mrb[68].mxu0 }
 0x39e   :  { %v2191_v26 = vpop.f32.mrb[69].mxu0 }
 0x39f   :  { %v2192_v5 = vadd.f32 %v2191_v26, %v2190_v41  ;;  %v2193_v43 = vpop.f32.mrb[70].mxu0  ;;  %v1783_v42 = vpack.c.bf16 %v1763_v61, %v1762_v9 }
 0x3a0   :  { %v2194_v46 = vpop.f32.mrb[71].mxu0 }
 0x3a1   :  { %v1716_v38 = vadd.f32 %v2192_v5, %v3186_v31  ;;  %v2195_v25 = vadd.f32 %v2194_v46, %v2193_v43  ;;  %2216 = vmatprep.subr.bf16.mxu1 %v1783_v42 }
 0x3a2   :  { %2217 = vmatpush3.bf16.msra.mxu1 %v3194_v40 }
 0x3a3   :  { %v1719_v47 = vadd.f32 %v2195_v25, %v3188_v22  ;;  %v1764_v53 = vmax.f32 %v1716_v38, 0.0 }
 0x3a5   :  { %v1765_v45 = vmax.f32 %v1719_v47, 0.0  ;;  %v2196_v6 = vpop.f32.mrb[72].mxu0 }
 0x3a6   :  { %v2197_v37 = vpop.f32.mrb[73].mxu0 }
 0x3a7   :  { %v2198_v54 = vadd.f32 %v2197_v37, %v2196_v6  ;;  %v2199_v56 = vpop.f32.mrb[74].mxu0  ;;  %v1784_v59 = vpack.c.bf16 %v1765_v45, %v1764_v53 }
 0x3a8   :  { %v2200_v3 = vpop.f32.mrb[75].mxu0 }
 0x3a9   :  { %v1724_v63 = vadd.f32 %v2198_v54, %v3192_v60  ;;  %v2201_v1 = vadd.f32 %v2200_v3, %v2199_v56  ;;  %2218 = vmatprep.subr.bf16.mxu1 %v1784_v59 }
 0x3aa   :  { %2219 = vmatpush3.bf16.msra.mxu1 %v3198_v55 }
 0x3ab   :  { %v1727_v31 = vadd.f32 %v2201_v1, %v3196_v49  ;;  %v1766_v15 = vmax.f32 %v1724_v63, 0.0 }
 0x3ad   :  { %v1767_v40 = vmax.f32 %v1727_v31, 0.0  ;;  %v2202_v0 = vpop.f32.mrb[76].mxu0 }
 0x3ae   :  { %v2203_v22 = vpop.f32.mrb[77].mxu0 }
 0x3af   :  { %v2204_v2 = vadd.f32 %v2203_v22, %v2202_v0  ;;  %v2205_v18 = vpop.f32.mrb[78].mxu0  ;;  %v1785_v23 = vpack.c.bf16 %v1767_v40, %v1766_v15 }
 0x3b0   :  { %v2206_v52 = vpop.f32.mrb[79].mxu0 }
 0x3b1   :  { %v1732_v14 = vadd.f32 %v2204_v2, %v3200_v11  ;;  %v2207_v51 = vadd.f32 %v2206_v52, %v2205_v18  ;;  %2220 = vmatprep.subr.bf16.mxu1 %v1785_v23  ;;  %v1788_v11 = vstv %s3258_s8 }
 0x3b2   :  { %2221 = vmatpush3.bf16.msra.mxu1 %v3204_v20 }
 0x3b3   :  { %v1735_v60 = vadd.f32 %v2207_v51, %v3202_v32  ;;  %v1768_v62 = vmax.f32 %v1732_v14, 0.0 }
 0x3b5   :  { %v1769_v55 = vmax.f32 %v1735_v60, 0.0 }
 0x3b7   :  { %v1786_v7 = vpack.c.bf16 %v1769_v55, %v1768_v62 }
 0x3b9   :  { %2222 = vmatprep.subr.bf16.mxu1 %v1786_v7 }
 0x3ba   :  { %2223 = vmatpush3.bf16.msra.mxu1 %v3206_v4 }
 0x3bd   :  { %1847 = vmatmul.mubr.bf16.vlgmr.msra.gmra.mrb[80].mxu1 %v1804_v33 }
 0x490   :  { %v2224_v49 = vpop.f32.mrb[80].mxu1 }
 0x491   :  { %v2225_v21 = vpop.f32.mrb[81].mxu1 }
 0x492   :  { %v2226_v20 = vadd.f32 %v2225_v21, %v2224_v49  ;;  %v2227_v32 = vpop.f32.mrb[82].mxu1 }
 0x493   :  { %v2228_v17 = vpop.f32.mrb[83].mxu1 }
 0x494   :  { %v1849_v24 = vadd.f32 %v2226_v20, %v1788_v11 }
 0x496   :  { %1855 = vst.msk [vmem:[#allocation3] sm:$0x1] %vm1854_vm1, %v1849_v24 }
 0x497   :  { %2394 = shalt.err (!%p2391_p4)
}
 0x498   :  { %s2395_s6 = scalar_lea.hbm %s3259_s9, 16 }
 0x499   :  { %p2396_p5 = scmp.ne.s32.totalorder %s3259_s9, %s2395_s6  ;;  %p2399_p6 = scmp.lt.u32.totalorder %s2395_s6, %s3259_s9 }
 0x49b   :  { %p2401_p7 = pnand %p2399_p6, %p2396_p5 }
 0x49d   :  { %2404 = shalt.err (!%p2401_p7)
}
 0x49e   :  { %1865 = dma.vmem_to_hbm [thread:$0]  %s1863_s22, 16, %s3259_s9, [#allocation4]  }
 0x49f   :  { %2405 = dma.done.wait [#allocation4], 16  }
 0x4a0   :  { %2406 = vsyncadd [#allocation4], 4294967280 }
 0x4a1   :  { %1869 = vsyncpa [#allocation4], 1 }

</bundles_post_ra>
